<compile_context>
chip_gen: v6e
topology: v6e:2x2x1
jax: 0.10.0
libtpu: 0.0.40
codegen_flags: <defaults>
</compile_context>

<pallas_src>
import functools

import jax
import jax.numpy as jnp
import numpy as np
from jax import lax
from jax.experimental import pallas as pl
from jax.experimental.pallas import tpu as pltpu


def _round_up(x, m):
    return ((x + m - 1) // m) * m


def _pack_gates(w, H, Hp):
    """Reorder gate columns [i|f|g|o] -> [i|f|o|g] and zero-pad each gate to Hp lanes."""
    w = jnp.asarray(w, jnp.float32)
    i_g, f_g, g_g, o_g = (w[..., k * H:(k + 1) * H] for k in range(4))
    pad = [(0, 0)] * (w.ndim - 1) + [(0, Hp - H)]
    return jnp.concatenate([jnp.pad(x, pad) for x in (i_g, f_g, o_g, g_g)], axis=-1)


def _pick_time_chunk(T, Bp, Hp, *, vmem_budget_bytes, cap=128):
    """Largest divisor of T whose per-chunk VMEM footprint fits the budget."""
    # Resident: double-buffered bf16 W_hh + f32 h/c scratch.
    fixed = 2 * (Hp * 4 * Hp * 2) + 2 * (Bp * Hp * 4)
    # Per timestep: double-buffered f32 gates_x chunk + double-buffered f32 h_out chunk.
    per_step = 2 * (Bp * 4 * Hp * 4) + 2 * (Bp * Hp * 4)
    avail = max(vmem_budget_bytes - fixed, per_step)
    c_max = int(max(1, min(cap, avail // per_step, T)))
    for c in range(c_max, 0, -1):
        if T % c == 0:
            return c
    return 1


# ----------------------------- Pallas kernel --------------------------------

def lstm_recurrence_kernel(gx_ref, whh_ref, h_out_ref, h_sc, c_sc, *, unroll):
    """One grid step = one chunk of C timesteps of the LSTM recurrence.

    gx_ref:    (C, Bp, 4Hp) f32   precomputed x @ W_ih + (b_ih + b_hh), gate order [i|f|o|g]
    whh_ref:   (Hp, 4Hp)    bf16  recurrent weight (constant block index -> VMEM-resident)
    h_out_ref: (C, Bp, Hp)  f32   hidden states for this chunk (time-major)
    h_sc/c_sc: (Bp, Hp)     f32   LSTM state, resident in VMEM scratch across grid steps
    """
    @pl.when(pl.program_id(0) == 0)
    def _init():
        h_sc[...] = jnp.zeros_like(h_sc)
        c_sc[...] = jnp.zeros_like(c_sc)

    C = gx_ref.shape[0]
    Hp = h_sc.shape[1]
    whh = whh_ref[...]          # hoisted bf16 load, reused by every step of the chunk

    def step(t, carry):
        h_prev = h_sc[...]
        c_prev = c_sc[...]

        # Only the serial part stays in the loop: (Bp, Hp) @ (Hp, 4Hp), bf16 MXU,
        # f32 accumulation.
        gates = gx_ref[t] + jnp.dot(h_prev.astype(whh.dtype), whh,
                                    preferred_element_type=jnp.float32)

        # Gate order [i | f | o | g]: one sigmoid over a contiguous 3*Hp slab,
        # one tanh over the last Hp lanes. Every slice is a whole vreg group.
        sig = jax.nn.sigmoid(gates[:, : 3 * Hp])
        i_g = sig[:, 0 * Hp:1 * Hp]
        f_g = sig[:, 1 * Hp:2 * Hp]
        o_g = sig[:, 2 * Hp:3 * Hp]
        g_g = jnp.tanh(gates[:, 3 * Hp:])

        c_new = f_g * c_prev + i_g * g_g
        h_new = o_g * jnp.tanh(c_new)

        c_sc[...] = c_new
        h_sc[...] = h_new
        h_out_ref[t] = h_new        # lane-dense (Bp, Hp) unmasked store
        return carry

    lax.fori_loop(0, C, step, 0, unroll=unroll)


def lstm_recurrence_pallas(gates_x_tbp, w_hh_p, *, time_chunk, vmem_limit_bytes):
    """gates_x_tbp: (T, Bp, 4Hp) f32, w_hh_p: (Hp, 4Hp) bf16 -> h: (T, Bp, Hp) f32."""
    T, Bp, G4 = gates_x_tbp.shape
    Hp = w_hh_p.shape[0]
    assert G4 == 4 * Hp
    C = time_chunk
    assert T % C == 0
    n_chunks = T // C

    # Full unroll only while per-step gate slab is a handful of vregs; partial
    # unroll keeps LLO visibility without a vreg-pressure cliff at large H.
    per_step_bytes = Bp * 4 * Hp * 4
    unroll = C if per_step_bytes <= 64 * 1024 else max(1, min(C, 4))

    kernel = functools.partial(lstm_recurrence_kernel, unroll=unroll)

    grid_spec = pltpu.PrefetchScalarGridSpec(
        num_scalar_prefetch=0,
        grid=(n_chunks,),
        in_specs=[
            pl.BlockSpec((C, Bp, G4), lambda i: (i, 0, 0)),   # gates_x chunk
            pl.BlockSpec((Hp, G4), lambda i: (0, 0)),         # W_hh (resident, bf16)
        ],
        out_specs=pl.BlockSpec((C, Bp, Hp), lambda i: (i, 0, 0)),
        scratch_shapes=[
            pltpu.VMEM((Bp, Hp), jnp.float32),   # h state
            pltpu.VMEM((Bp, Hp), jnp.float32),   # c state
        ],
    )

    return pl.pallas_call(
        kernel,
        out_shape=jax.ShapeDtypeStruct((T, Bp, Hp), jnp.float32),
        grid_spec=grid_spec,
        compiler_params=pltpu.CompilerParams(
            dimension_semantics=("arbitrary",),   # time recurrence is serial
            vmem_limit_bytes=vmem_limit_bytes,
        ),
    )(gates_x_tbp, w_hh_p)


# ----------------------------- Module wrapper --------------------------------

def nlp_forward(token_ids, params, *, vmem_budget_bytes=32 << 20):
    """Equivalent of NLP.forward: (B, T) int32 -> (B, T, V) float32 logits."""
    B, T = token_ids.shape
    H = params["w_hh"].shape[0]
    E = params["embedding"].shape[1]

    Hp = _round_up(H, 128)          # lane-align the hidden/gate dimension
    Bp = _round_up(max(B, 1), 8)    # sublane-align the batch

    # One-time param repacking: gate order [i|f|o|g], per-gate zero padding to Hp.
    w_ih_p = _pack_gates(params["w_ih"], H, Hp)                       # (E, 4Hp)
    b_p = _pack_gates(params["b"], H, Hp)                             # (1, 4Hp)
    w_hh_p = _pack_gates(params["w_hh"], H, Hp)                       # (H, 4Hp)
    w_hh_p = jnp.pad(w_hh_p, ((0, Hp - H), (0, 0))).astype(jnp.bfloat16)  # (Hp, 4Hp)

    # Embedding gather directly in time-major (T, B, E) order: no HBM transpose.
    emb_tbe = jnp.take(params["embedding"], token_ids.T, axis=0).astype(jnp.float32)

    # Hoisted input projection: one batched MXU matmul instead of T tiny ones.
    # NOTE: padded batch rows / padded gate lanes stay zero here; the kernel
    # relies on that (padded h/c then stay exactly zero).
    gates_x = (emb_tbe.reshape(T * B, E) @ w_ih_p + b_p).reshape(T, B, 4 * Hp)
    if Bp != B:
        gates_x = jnp.pad(gates_x, ((0, 0), (0, Bp - B), (0, 0)))

    C = _pick_time_chunk(T, Bp, Hp, vmem_budget_bytes=vmem_budget_bytes)
    h_tbp = lstm_recurrence_pallas(gates_x, w_hh_p, time_chunk=C,
                                   vmem_limit_bytes=vmem_budget_bytes)  # (T, Bp, Hp)

    # Hoisted output Linear, (T,B)->(B,T) transpose folded into the contraction's
    # output layout (lane-dense V-wide writes at real vocab sizes).
    # TODO(synk): for realistic V (>=128), fuse h_chunk @ W_out into the kernel per
    # chunk to avoid the HBM round-trip of h.
    h = h_tbp[:, :B, :H]                                              # (T, B, H)
    logits = jnp.einsum("tbh,hv->btv", h, params["w_out"],
                        preferred_element_type=jnp.float32) + params["b_out"][0]
    return logits                                                     # (B, T, V)


# ----------------------------- Pure-JAX reference ----------------------------

def nlp_forward_ref(token_ids, params):
    """Reference LSTM forward (PyTorch gate order i,f,g,o), mirroring the kernel's
    bf16 recurrent-weight path so the comparison isolates kernel correctness."""
    emb = jnp.take(params["embedding"], token_ids, axis=0).astype(jnp.float32)  # (B,T,E)
    B, T, E = emb.shape
    H = params["w_hh"].shape[0]
    w_hh_bf16 = params["w_hh"].astype(jnp.bfloat16)

    def step(carry, x_t):
        h, c = carry
        gx = x_t @ params["w_ih"] + params["b"][0]
        gates = gx + jnp.dot(h.astype(jnp.bfloat16), w_hh_bf16,
                             preferred_element_type=jnp.float32)
        i = jax.nn.sigmoid(gates[:, 0 * H:1 * H])
        f = jax.nn.sigmoid(gates[:, 1 * H:2 * H])
        g = jnp.tanh(gates[:, 2 * H:3 * H])
        o = jax.nn.sigmoid(gates[:, 3 * H:4 * H])
        c = f * c + i * g
        h = o * jnp.tanh(c)
        return (h, c), h

    h0 = jnp.zeros((B, H), jnp.float32)
    c0 = jnp.zeros((B, H), jnp.float32)
    _, hs = lax.scan(step, (h0, c0), jnp.transpose(emb, (1, 0, 2)))
    lstm_out = jnp.transpose(hs, (1, 0, 2))                           # (B, T, H)
    return lstm_out @ params["w_out"] + params["b_out"][0]            # (B, T, V)


# ----------------------------- Main -------------------------------------------

if __name__ == "__main__":
    # Small shapes consistent with the module: vocab=16, embedding_dim=8, rnn_units=64.
    VOCAB = 16      # input_dim
    EMB = 8         # embedding_dim
    HID = 64        # rnn_units
    B, T = 2, 8

    key = jax.random.PRNGKey(0)
    ks = jax.random.split(key, 8)

    params = {
        "embedding": jax.random.normal(ks[0], (VOCAB, EMB), jnp.float32) * 0.5,
        # LSTM params in PyTorch gate order (i, f, g, o), stored transposed so the
        # projections are x @ W_ih and h @ W_hh directly.
        "w_ih": jax.random.normal(ks[1], (EMB, 4 * HID), jnp.float32) * 0.1,
        "w_hh": jax.random.normal(ks[2], (HID, 4 * HID), jnp.float32) * 0.1,
        "b": (jax.random.normal(ks[3], (1, 4 * HID), jnp.float32) * 0.1
              + jax.random.normal(ks[4], (1, 4 * HID), jnp.float32) * 0.1),
        "w_out": jax.random.normal(ks[5], (HID, VOCAB), jnp.float32) * 0.1,
        "b_out": jax.random.normal(ks[6], (1, VOCAB), jnp.float32) * 0.1,
    }

    token_ids = jax.random.randint(ks[7], (B, T), 0, VOCAB, dtype=jnp.int32)

    y = jax.block_until_ready(nlp_forward(token_ids, params))
    y_ref = jax.block_until_ready(nlp_forward_ref(token_ids, params))

    assert y.shape == (B, T, VOCAB)
    np.testing.assert_allclose(np.asarray(y), np.asarray(y_ref),
                               rtol=1e-3, atol=1e-4)
    print("KERNEL_OK")
</pallas_src>

<mosaic_0001>
module attributes {stable_mosaic.version = 11 : i64} {
  func.func @lstm_recurrence_kernel(%arg0: i32, %arg1: memref<8x8x512xf32, #tpu.memory_space<vmem>>, %arg2: memref<128x512xbf16, #tpu.memory_space<vmem>>, %arg3: memref<8x8x128xf32, #tpu.memory_space<vmem>>, %arg4: memref<8x128xf32, #tpu.memory_space<vmem>>, %arg5: memref<8x128xf32, #tpu.memory_space<vmem>>) attributes {dimension_semantics = [#tpu.dimension_semantics<arbitrary>], iteration_bounds = array<i64: 1>, scalar_prefetch = 0 : i64, scratch_operands = 2 : i64, tpu.core_type = #tpu.core_type<tc>, window_params = [{transform_indices = @transform_0, window_bounds = array<i64: 8, 8, 512>}, {pipeline_mode = #tpu.pipeline_mode<synchronous>, transform_indices = @transform_1, window_bounds = array<i64: 128, 512>}, {transform_indices = @transform_2, window_bounds = array<i64: 8, 8, 128>}]} {
    %c0_i32 = arith.constant 0 : i32
    %0 = arith.cmpi eq, %arg0, %c0_i32 : i32
    %1 = arith.extui %0 : i1 to i32
    %c0_i32_0 = arith.constant 0 : i32
    %2 = arith.cmpi ne, %1, %c0_i32_0 : i32
    scf.if %2 {
      %cst_114 = arith.constant 0.000000e+00 : f32
      %244 = vector.broadcast %cst_114 : f32 to vector<8x128xf32>
      %c0_115 = arith.constant 0 : index
      %c0_116 = arith.constant 0 : index
      %245 = vector.load %arg4[%c0_115, %c0_116] : memref<8x128xf32, #tpu.memory_space<vmem>>, vector<8x128xf32>
      tpu.vector_store %arg4[%c0_115, %c0_116], %244 {strides = array<i32>} : memref<8x128xf32, #tpu.memory_space<vmem>>, vector<8x128xf32>,
      %cst_117 = arith.constant 0.000000e+00 : f32
      %246 = vector.broadcast %cst_117 : f32 to vector<8x128xf32>
      %c0_118 = arith.constant 0 : index
      %c0_119 = arith.constant 0 : index
      %247 = vector.load %arg5[%c0_118, %c0_119] : memref<8x128xf32, #tpu.memory_space<vmem>>, vector<8x128xf32>
      tpu.vector_store %arg5[%c0_118, %c0_119], %246 {strides = array<i32>} : memref<8x128xf32, #tpu.memory_space<vmem>>, vector<8x128xf32>,
    } else {
    }
    %c0 = arith.constant 0 : index
    %c0_1 = arith.constant 0 : index
    %3 = vector.load %arg2[%c0, %c0_1] : memref<128x512xbf16, #tpu.memory_space<vmem>>, vector<128x512xbf16>
    %c0_i32_2 = arith.constant 0 : i32
    %c0_3 = arith.constant 0 : index
    %c0_4 = arith.constant 0 : index
    %4 = vector.load %arg4[%c0_3, %c0_4] : memref<8x128xf32, #tpu.memory_space<vmem>>, vector<8x128xf32>
    %c0_5 = arith.constant 0 : index
    %c0_6 = arith.constant 0 : index
    %5 = vector.load %arg5[%c0_5, %c0_6] : memref<8x128xf32, #tpu.memory_space<vmem>>, vector<8x128xf32>
    %6 = arith.index_cast %c0_i32_2 : i32 to index
    %c0_7 = arith.constant 0 : index
    %c0_8 = arith.constant 0 : index
    %7 = vector.load %arg1[%6, %c0_7, %c0_8] : memref<8x8x512xf32, #tpu.memory_space<vmem>>, vector<1x8x512xf32>
    %8 = vector.shape_cast %7 : vector<1x8x512xf32> to vector<8x512xf32>
    %9 = arith.truncf %4 : vector<8x128xf32> to vector<8x128xbf16>
    %cst = arith.constant dense<0.000000e+00> : vector<8x512xf32>
    %10 = tpu.matmul %9, %3, %cst {dimension_numbers = #tpu.dot_dimension_numbers<[1], [0], [0], [1], [0, 0, 1, 1], [], []>} : vector<8x128xbf16>, vector<128x512xbf16>, vector<8x512xf32> -> vector<8x512xf32>
    %11 = arith.addf %8, %10 : vector<8x512xf32>
    %12 = vector.extract_strided_slice %11 {offsets = [0, 0], sizes = [8, 384], strides = [1, 1]} : vector<8x512xf32> to vector<8x384xf32>
    %13 = arith.negf %12 : vector<8x384xf32>
    %14 = math.exp %13 : vector<8x384xf32>
    %cst_9 = arith.constant 1.000000e+00 : f32
    %15 = vector.broadcast %cst_9 : f32 to vector<8x384xf32>
    %16 = arith.addf %15, %14 : vector<8x384xf32>
    %17 = arith.divf %15, %16 : vector<8x384xf32>
    %18 = vector.extract_strided_slice %17 {offsets = [0, 0], sizes = [8, 128], strides = [1, 1]} : vector<8x384xf32> to vector<8x128xf32>
    %19 = vector.extract_strided_slice %17 {offsets = [0, 128], sizes = [8, 128], strides = [1, 1]} : vector<8x384xf32> to vector<8x128xf32>
    %20 = vector.extract_strided_slice %17 {offsets = [0, 256], sizes = [8, 128], strides = [1, 1]} : vector<8x384xf32> to vector<8x128xf32>
    %21 = vector.extract_strided_slice %11 {offsets = [0, 384], sizes = [8, 128], strides = [1, 1]} : vector<8x512xf32> to vector<8x128xf32>
    %22 = math.tanh %21 : vector<8x128xf32>
    %23 = arith.mulf %19, %5 : vector<8x128xf32>
    %24 = arith.mulf %18, %22 : vector<8x128xf32>
    %25 = arith.addf %23, %24 : vector<8x128xf32>
    %26 = math.tanh %25 : vector<8x128xf32>
    %27 = arith.mulf %20, %26 : vector<8x128xf32>
    %c0_10 = arith.constant 0 : index
    %c0_11 = arith.constant 0 : index
    %28 = vector.load %arg5[%c0_10, %c0_11] : memref<8x128xf32, #tpu.memory_space<vmem>>, vector<8x128xf32>
    tpu.vector_store %arg5[%c0_10, %c0_11], %25 {strides = array<i32>} : memref<8x128xf32, #tpu.memory_space<vmem>>, vector<8x128xf32>,
    %c0_12 = arith.constant 0 : index
    %c0_13 = arith.constant 0 : index
    %29 = vector.load %arg4[%c0_12, %c0_13] : memref<8x128xf32, #tpu.memory_space<vmem>>, vector<8x128xf32>
    tpu.vector_store %arg4[%c0_12, %c0_13], %27 {strides = array<i32>} : memref<8x128xf32, #tpu.memory_space<vmem>>, vector<8x128xf32>,
    %30 = arith.index_cast %c0_i32_2 : i32 to index
    %c0_14 = arith.constant 0 : index
    %c0_15 = arith.constant 0 : index
    %31 = vector.load %arg3[%30, %c0_14, %c0_15] : memref<8x8x128xf32, #tpu.memory_space<vmem>>, vector<1x8x128xf32>
    %32 = vector.shape_cast %31 : vector<1x8x128xf32> to vector<8x128xf32>
    %33 = vector.shape_cast %27 : vector<8x128xf32> to vector<1x8x128xf32>
    tpu.vector_store %arg3[%30, %c0_14, %c0_15], %33 {strides = array<i32>} : memref<8x8x128xf32, #tpu.memory_space<vmem>>, vector<1x8x128xf32>,
    %c1_i32 = arith.constant 1 : i32
    %c0_16 = arith.constant 0 : index
    %c0_17 = arith.constant 0 : index
    %34 = vector.load %arg4[%c0_16, %c0_17] : memref<8x128xf32, #tpu.memory_space<vmem>>, vector<8x128xf32>
    %c0_18 = arith.constant 0 : index
    %c0_19 = arith.constant 0 : index
    %35 = vector.load %arg5[%c0_18, %c0_19] : memref<8x128xf32, #tpu.memory_space<vmem>>, vector<8x128xf32>
    %36 = arith.index_cast %c1_i32 : i32 to index
    %c0_20 = arith.constant 0 : index
    %c0_21 = arith.constant 0 : index
    %37 = vector.load %arg1[%36, %c0_20, %c0_21] : memref<8x8x512xf32, #tpu.memory_space<vmem>>, vector<1x8x512xf32>
    %38 = vector.shape_cast %37 : vector<1x8x512xf32> to vector<8x512xf32>
    %39 = arith.truncf %34 : vector<8x128xf32> to vector<8x128xbf16>
    %cst_22 = arith.constant dense<0.000000e+00> : vector<8x512xf32>
    %40 = tpu.matmul %39, %3, %cst_22 {dimension_numbers = #tpu.dot_dimension_numbers<[1], [0], [0], [1], [0, 0, 1, 1], [], []>} : vector<8x128xbf16>, vector<128x512xbf16>, vector<8x512xf32> -> vector<8x512xf32>
    %41 = arith.addf %38, %40 : vector<8x512xf32>
    %42 = vector.extract_strided_slice %41 {offsets = [0, 0], sizes = [8, 384], strides = [1, 1]} : vector<8x512xf32> to vector<8x384xf32>
    %43 = arith.negf %42 : vector<8x384xf32>
    %44 = math.exp %43 : vector<8x384xf32>
    %cst_23 = arith.constant 1.000000e+00 : f32
    %45 = vector.broadcast %cst_23 : f32 to vector<8x384xf32>
    %46 = arith.addf %45, %44 : vector<8x384xf32>
    %47 = arith.divf %45, %46 : vector<8x384xf32>
    %48 = vector.extract_strided_slice %47 {offsets = [0, 0], sizes = [8, 128], strides = [1, 1]} : vector<8x384xf32> to vector<8x128xf32>
    %49 = vector.extract_strided_slice %47 {offsets = [0, 128], sizes = [8, 128], strides = [1, 1]} : vector<8x384xf32> to vector<8x128xf32>
    %50 = vector.extract_strided_slice %47 {offsets = [0, 256], sizes = [8, 128], strides = [1, 1]} : vector<8x384xf32> to vector<8x128xf32>
    %51 = vector.extract_strided_slice %41 {offsets = [0, 384], sizes = [8, 128], strides = [1, 1]} : vector<8x512xf32> to vector<8x128xf32>
    %52 = math.tanh %51 : vector<8x128xf32>
    %53 = arith.mulf %49, %35 : vector<8x128xf32>
    %54 = arith.mulf %48, %52 : vector<8x128xf32>
    %55 = arith.addf %53, %54 : vector<8x128xf32>
    %56 = math.tanh %55 : vector<8x128xf32>
    %57 = arith.mulf %50, %56 : vector<8x128xf32>
    %c0_24 = arith.constant 0 : index
    %c0_25 = arith.constant 0 : index
    %58 = vector.load %arg5[%c0_24, %c0_25] : memref<8x128xf32, #tpu.memory_space<vmem>>, vector<8x128xf32>
    tpu.vector_store %arg5[%c0_24, %c0_25], %55 {strides = array<i32>} : memref<8x128xf32, #tpu.memory_space<vmem>>, vector<8x128xf32>,
    %c0_26 = arith.constant 0 : index
    %c0_27 = arith.constant 0 : index
    %59 = vector.load %arg4[%c0_26, %c0_27] : memref<8x128xf32, #tpu.memory_space<vmem>>, vector<8x128xf32>
    tpu.vector_store %arg4[%c0_26, %c0_27], %57 {strides = array<i32>} : memref<8x128xf32, #tpu.memory_space<vmem>>, vector<8x128xf32>,
    %60 = arith.index_cast %c1_i32 : i32 to index
    %c0_28 = arith.constant 0 : index
    %c0_29 = arith.constant 0 : index
    %61 = vector.load %arg3[%60, %c0_28, %c0_29] : memref<8x8x128xf32, #tpu.memory_space<vmem>>, vector<1x8x128xf32>
    %62 = vector.shape_cast %61 : vector<1x8x128xf32> to vector<8x128xf32>
    %63 = vector.shape_cast %57 : vector<8x128xf32> to vector<1x8x128xf32>
    tpu.vector_store %arg3[%60, %c0_28, %c0_29], %63 {strides = array<i32>} : memref<8x8x128xf32, #tpu.memory_space<vmem>>, vector<1x8x128xf32>,
    %c2_i32 = arith.constant 2 : i32
    %c0_30 = arith.constant 0 : index
    %c0_31 = arith.constant 0 : index
    %64 = vector.load %arg4[%c0_30, %c0_31] : memref<8x128xf32, #tpu.memory_space<vmem>>, vector<8x128xf32>
    %c0_32 = arith.constant 0 : index
    %c0_33 = arith.constant 0 : index
    %65 = vector.load %arg5[%c0_32, %c0_33] : memref<8x128xf32, #tpu.memory_space<vmem>>, vector<8x128xf32>
    %66 = arith.index_cast %c2_i32 : i32 to index
    %c0_34 = arith.constant 0 : index
    %c0_35 = arith.constant 0 : index
    %67 = vector.load %arg1[%66, %c0_34, %c0_35] : memref<8x8x512xf32, #tpu.memory_space<vmem>>, vector<1x8x512xf32>
    %68 = vector.shape_cast %67 : vector<1x8x512xf32> to vector<8x512xf32>
    %69 = arith.truncf %64 : vector<8x128xf32> to vector<8x128xbf16>
    %cst_36 = arith.constant dense<0.000000e+00> : vector<8x512xf32>
    %70 = tpu.matmul %69, %3, %cst_36 {dimension_numbers = #tpu.dot_dimension_numbers<[1], [0], [0], [1], [0, 0, 1, 1], [], []>} : vector<8x128xbf16>, vector<128x512xbf16>, vector<8x512xf32> -> vector<8x512xf32>
    %71 = arith.addf %68, %70 : vector<8x512xf32>
    %72 = vector.extract_strided_slice %71 {offsets = [0, 0], sizes = [8, 384], strides = [1, 1]} : vector<8x512xf32> to vector<8x384xf32>
    %73 = arith.negf %72 : vector<8x384xf32>
    %74 = math.exp %73 : vector<8x384xf32>
    %cst_37 = arith.constant 1.000000e+00 : f32
    %75 = vector.broadcast %cst_37 : f32 to vector<8x384xf32>
    %76 = arith.addf %75, %74 : vector<8x384xf32>
    %77 = arith.divf %75, %76 : vector<8x384xf32>
    %78 = vector.extract_strided_slice %77 {offsets = [0, 0], sizes = [8, 128], strides = [1, 1]} : vector<8x384xf32> to vector<8x128xf32>
    %79 = vector.extract_strided_slice %77 {offsets = [0, 128], sizes = [8, 128], strides = [1, 1]} : vector<8x384xf32> to vector<8x128xf32>
    %80 = vector.extract_strided_slice %77 {offsets = [0, 256], sizes = [8, 128], strides = [1, 1]} : vector<8x384xf32> to vector<8x128xf32>
    %81 = vector.extract_strided_slice %71 {offsets = [0, 384], sizes = [8, 128], strides = [1, 1]} : vector<8x512xf32> to vector<8x128xf32>
    %82 = math.tanh %81 : vector<8x128xf32>
    %83 = arith.mulf %79, %65 : vector<8x128xf32>
    %84 = arith.mulf %78, %82 : vector<8x128xf32>
    %85 = arith.addf %83, %84 : vector<8x128xf32>
    %86 = math.tanh %85 : vector<8x128xf32>
    %87 = arith.mulf %80, %86 : vector<8x128xf32>
    %c0_38 = arith.constant 0 : index
    %c0_39 = arith.constant 0 : index
    %88 = vector.load %arg5[%c0_38, %c0_39] : memref<8x128xf32, #tpu.memory_space<vmem>>, vector<8x128xf32>
    tpu.vector_store %arg5[%c0_38, %c0_39], %85 {strides = array<i32>} : memref<8x128xf32, #tpu.memory_space<vmem>>, vector<8x128xf32>,
    %c0_40 = arith.constant 0 : index
    %c0_41 = arith.constant 0 : index
    %89 = vector.load %arg4[%c0_40, %c0_41] : memref<8x128xf32, #tpu.memory_space<vmem>>, vector<8x128xf32>
    tpu.vector_store %arg4[%c0_40, %c0_41], %87 {strides = array<i32>} : memref<8x128xf32, #tpu.memory_space<vmem>>, vector<8x128xf32>,
    %90 = arith.index_cast %c2_i32 : i32 to index
    %c0_42 = arith.constant 0 : index
    %c0_43 = arith.constant 0 : index
    %91 = vector.load %arg3[%90, %c0_42, %c0_43] : memref<8x8x128xf32, #tpu.memory_space<vmem>>, vector<1x8x128xf32>
    %92 = vector.shape_cast %91 : vector<1x8x128xf32> to vector<8x128xf32>
    %93 = vector.shape_cast %87 : vector<8x128xf32> to vector<1x8x128xf32>
    tpu.vector_store %arg3[%90, %c0_42, %c0_43], %93 {strides = array<i32>} : memref<8x8x128xf32, #tpu.memory_space<vmem>>, vector<1x8x128xf32>,
    %c3_i32 = arith.constant 3 : i32
    %c0_44 = arith.constant 0 : index
    %c0_45 = arith.constant 0 : index
    %94 = vector.load %arg4[%c0_44, %c0_45] : memref<8x128xf32, #tpu.memory_space<vmem>>, vector<8x128xf32>
    %c0_46 = arith.constant 0 : index
    %c0_47 = arith.constant 0 : index
    %95 = vector.load %arg5[%c0_46, %c0_47] : memref<8x128xf32, #tpu.memory_space<vmem>>, vector<8x128xf32>
    %96 = arith.index_cast %c3_i32 : i32 to index
    %c0_48 = arith.constant 0 : index
    %c0_49 = arith.constant 0 : index
    %97 = vector.load %arg1[%96, %c0_48, %c0_49] : memref<8x8x512xf32, #tpu.memory_space<vmem>>, vector<1x8x512xf32>
    %98 = vector.shape_cast %97 : vector<1x8x512xf32> to vector<8x512xf32>
    %99 = arith.truncf %94 : vector<8x128xf32> to vector<8x128xbf16>
    %cst_50 = arith.constant dense<0.000000e+00> : vector<8x512xf32>
    %100 = tpu.matmul %99, %3, %cst_50 {dimension_numbers = #tpu.dot_dimension_numbers<[1], [0], [0], [1], [0, 0, 1, 1], [], []>} : vector<8x128xbf16>, vector<128x512xbf16>, vector<8x512xf32> -> vector<8x512xf32>
    %101 = arith.addf %98, %100 : vector<8x512xf32>
    %102 = vector.extract_strided_slice %101 {offsets = [0, 0], sizes = [8, 384], strides = [1, 1]} : vector<8x512xf32> to vector<8x384xf32>
    %103 = arith.negf %102 : vector<8x384xf32>
    %104 = math.exp %103 : vector<8x384xf32>
    %cst_51 = arith.constant 1.000000e+00 : f32
    %105 = vector.broadcast %cst_51 : f32 to vector<8x384xf32>
    %106 = arith.addf %105, %104 : vector<8x384xf32>
    %107 = arith.divf %105, %106 : vector<8x384xf32>
    %108 = vector.extract_strided_slice %107 {offsets = [0, 0], sizes = [8, 128], strides = [1, 1]} : vector<8x384xf32> to vector<8x128xf32>
    %109 = vector.extract_strided_slice %107 {offsets = [0, 128], sizes = [8, 128], strides = [1, 1]} : vector<8x384xf32> to vector<8x128xf32>
    %110 = vector.extract_strided_slice %107 {offsets = [0, 256], sizes = [8, 128], strides = [1, 1]} : vector<8x384xf32> to vector<8x128xf32>
    %111 = vector.extract_strided_slice %101 {offsets = [0, 384], sizes = [8, 128], strides = [1, 1]} : vector<8x512xf32> to vector<8x128xf32>
    %112 = math.tanh %111 : vector<8x128xf32>
    %113 = arith.mulf %109, %95 : vector<8x128xf32>
    %114 = arith.mulf %108, %112 : vector<8x128xf32>
    %115 = arith.addf %113, %114 : vector<8x128xf32>
    %116 = math.tanh %115 : vector<8x128xf32>
    %117 = arith.mulf %110, %116 : vector<8x128xf32>
    %c0_52 = arith.constant 0 : index
    %c0_53 = arith.constant 0 : index
    %118 = vector.load %arg5[%c0_52, %c0_53] : memref<8x128xf32, #tpu.memory_space<vmem>>, vector<8x128xf32>
    tpu.vector_store %arg5[%c0_52, %c0_53], %115 {strides = array<i32>} : memref<8x128xf32, #tpu.memory_space<vmem>>, vector<8x128xf32>,
    %c0_54 = arith.constant 0 : index
    %c0_55 = arith.constant 0 : index
    %119 = vector.load %arg4[%c0_54, %c0_55] : memref<8x128xf32, #tpu.memory_space<vmem>>, vector<8x128xf32>
    tpu.vector_store %arg4[%c0_54, %c0_55], %117 {strides = array<i32>} : memref<8x128xf32, #tpu.memory_space<vmem>>, vector<8x128xf32>,
    %120 = arith.index_cast %c3_i32 : i32 to index
    %c0_56 = arith.constant 0 : index
    %c0_57 = arith.constant 0 : index
    %121 = vector.load %arg3[%120, %c0_56, %c0_57] : memref<8x8x128xf32, #tpu.memory_space<vmem>>, vector<1x8x128xf32>
    %122 = vector.shape_cast %121 : vector<1x8x128xf32> to vector<8x128xf32>
    %123 = vector.shape_cast %117 : vector<8x128xf32> to vector<1x8x128xf32>
    tpu.vector_store %arg3[%120, %c0_56, %c0_57], %123 {strides = array<i32>} : memref<8x8x128xf32, #tpu.memory_space<vmem>>, vector<1x8x128xf32>,
    %c4_i32 = arith.constant 4 : i32
    %c0_58 = arith.constant 0 : index
    %c0_59 = arith.constant 0 : index
    %124 = vector.load %arg4[%c0_58, %c0_59] : memref<8x128xf32, #tpu.memory_space<vmem>>, vector<8x128xf32>
    %c0_60 = arith.constant 0 : index
    %c0_61 = arith.constant 0 : index
    %125 = vector.load %arg5[%c0_60, %c0_61] : memref<8x128xf32, #tpu.memory_space<vmem>>, vector<8x128xf32>
    %126 = arith.index_cast %c4_i32 : i32 to index
    %c0_62 = arith.constant 0 : index
    %c0_63 = arith.constant 0 : index
    %127 = vector.load %arg1[%126, %c0_62, %c0_63] : memref<8x8x512xf32, #tpu.memory_space<vmem>>, vector<1x8x512xf32>
    %128 = vector.shape_cast %127 : vector<1x8x512xf32> to vector<8x512xf32>
    %129 = arith.truncf %124 : vector<8x128xf32> to vector<8x128xbf16>
    %cst_64 = arith.constant dense<0.000000e+00> : vector<8x512xf32>
    %130 = tpu.matmul %129, %3, %cst_64 {dimension_numbers = #tpu.dot_dimension_numbers<[1], [0], [0], [1], [0, 0, 1, 1], [], []>} : vector<8x128xbf16>, vector<128x512xbf16>, vector<8x512xf32> -> vector<8x512xf32>
    %131 = arith.addf %128, %130 : vector<8x512xf32>
    %132 = vector.extract_strided_slice %131 {offsets = [0, 0], sizes = [8, 384], strides = [1, 1]} : vector<8x512xf32> to vector<8x384xf32>
    %133 = arith.negf %132 : vector<8x384xf32>
    %134 = math.exp %133 : vector<8x384xf32>
    %cst_65 = arith.constant 1.000000e+00 : f32
    %135 = vector.broadcast %cst_65 : f32 to vector<8x384xf32>
    %136 = arith.addf %135, %134 : vector<8x384xf32>
    %137 = arith.divf %135, %136 : vector<8x384xf32>
    %138 = vector.extract_strided_slice %137 {offsets = [0, 0], sizes = [8, 128], strides = [1, 1]} : vector<8x384xf32> to vector<8x128xf32>
    %139 = vector.extract_strided_slice %137 {offsets = [0, 128], sizes = [8, 128], strides = [1, 1]} : vector<8x384xf32> to vector<8x128xf32>
    %140 = vector.extract_strided_slice %137 {offsets = [0, 256], sizes = [8, 128], strides = [1, 1]} : vector<8x384xf32> to vector<8x128xf32>
    %141 = vector.extract_strided_slice %131 {offsets = [0, 384], sizes = [8, 128], strides = [1, 1]} : vector<8x512xf32> to vector<8x128xf32>
    %142 = math.tanh %141 : vector<8x128xf32>
    %143 = arith.mulf %139, %125 : vector<8x128xf32>
    %144 = arith.mulf %138, %142 : vector<8x128xf32>
    %145 = arith.addf %143, %144 : vector<8x128xf32>
    %146 = math.tanh %145 : vector<8x128xf32>
    %147 = arith.mulf %140, %146 : vector<8x128xf32>
    %c0_66 = arith.constant 0 : index
    %c0_67 = arith.constant 0 : index
    %148 = vector.load %arg5[%c0_66, %c0_67] : memref<8x128xf32, #tpu.memory_space<vmem>>, vector<8x128xf32>
    tpu.vector_store %arg5[%c0_66, %c0_67], %145 {strides = array<i32>} : memref<8x128xf32, #tpu.memory_space<vmem>>, vector<8x128xf32>,
    %c0_68 = arith.constant 0 : index
    %c0_69 = arith.constant 0 : index
    %149 = vector.load %arg4[%c0_68, %c0_69] : memref<8x128xf32, #tpu.memory_space<vmem>>, vector<8x128xf32>
    tpu.vector_store %arg4[%c0_68, %c0_69], %147 {strides = array<i32>} : memref<8x128xf32, #tpu.memory_space<vmem>>, vector<8x128xf32>,
    %150 = arith.index_cast %c4_i32 : i32 to index
    %c0_70 = arith.constant 0 : index
    %c0_71 = arith.constant 0 : index
    %151 = vector.load %arg3[%150, %c0_70, %c0_71] : memref<8x8x128xf32, #tpu.memory_space<vmem>>, vector<1x8x128xf32>
    %152 = vector.shape_cast %151 : vector<1x8x128xf32> to vector<8x128xf32>
    %153 = vector.shape_cast %147 : vector<8x128xf32> to vector<1x8x128xf32>
    tpu.vector_store %arg3[%150, %c0_70, %c0_71], %153 {strides = array<i32>} : memref<8x8x128xf32, #tpu.memory_space<vmem>>, vector<1x8x128xf32>,
    %c5_i32 = arith.constant 5 : i32
    %c0_72 = arith.constant 0 : index
    %c0_73 = arith.constant 0 : index
    %154 = vector.load %arg4[%c0_72, %c0_73] : memref<8x128xf32, #tpu.memory_space<vmem>>, vector<8x128xf32>
    %c0_74 = arith.constant 0 : index
    %c0_75 = arith.constant 0 : index
    %155 = vector.load %arg5[%c0_74, %c0_75] : memref<8x128xf32, #tpu.memory_space<vmem>>, vector<8x128xf32>
    %156 = arith.index_cast %c5_i32 : i32 to index
    %c0_76 = arith.constant 0 : index
    %c0_77 = arith.constant 0 : index
    %157 = vector.load %arg1[%156, %c0_76, %c0_77] : memref<8x8x512xf32, #tpu.memory_space<vmem>>, vector<1x8x512xf32>
    %158 = vector.shape_cast %157 : vector<1x8x512xf32> to vector<8x512xf32>
    %159 = arith.truncf %154 : vector<8x128xf32> to vector<8x128xbf16>
    %cst_78 = arith.constant dense<0.000000e+00> : vector<8x512xf32>
    %160 = tpu.matmul %159, %3, %cst_78 {dimension_numbers = #tpu.dot_dimension_numbers<[1], [0], [0], [1], [0, 0, 1, 1], [], []>} : vector<8x128xbf16>, vector<128x512xbf16>, vector<8x512xf32> -> vector<8x512xf32>
    %161 = arith.addf %158, %160 : vector<8x512xf32>
    %162 = vector.extract_strided_slice %161 {offsets = [0, 0], sizes = [8, 384], strides = [1, 1]} : vector<8x512xf32> to vector<8x384xf32>
    %163 = arith.negf %162 : vector<8x384xf32>
    %164 = math.exp %163 : vector<8x384xf32>
    %cst_79 = arith.constant 1.000000e+00 : f32
    %165 = vector.broadcast %cst_79 : f32 to vector<8x384xf32>
    %166 = arith.addf %165, %164 : vector<8x384xf32>
    %167 = arith.divf %165, %166 : vector<8x384xf32>
    %168 = vector.extract_strided_slice %167 {offsets = [0, 0], sizes = [8, 128], strides = [1, 1]} : vector<8x384xf32> to vector<8x128xf32>
    %169 = vector.extract_strided_slice %167 {offsets = [0, 128], sizes = [8, 128], strides = [1, 1]} : vector<8x384xf32> to vector<8x128xf32>
    %170 = vector.extract_strided_slice %167 {offsets = [0, 256], sizes = [8, 128], strides = [1, 1]} : vector<8x384xf32> to vector<8x128xf32>
    %171 = vector.extract_strided_slice %161 {offsets = [0, 384], sizes = [8, 128], strides = [1, 1]} : vector<8x512xf32> to vector<8x128xf32>
    %172 = math.tanh %171 : vector<8x128xf32>
    %173 = arith.mulf %169, %155 : vector<8x128xf32>
    %174 = arith.mulf %168, %172 : vector<8x128xf32>
    %175 = arith.addf %173, %174 : vector<8x128xf32>
    %176 = math.tanh %175 : vector<8x128xf32>
    %177 = arith.mulf %170, %176 : vector<8x128xf32>
    %c0_80 = arith.constant 0 : index
    %c0_81 = arith.constant 0 : index
    %178 = vector.load %arg5[%c0_80, %c0_81] : memref<8x128xf32, #tpu.memory_space<vmem>>, vector<8x128xf32>
    tpu.vector_store %arg5[%c0_80, %c0_81], %175 {strides = array<i32>} : memref<8x128xf32, #tpu.memory_space<vmem>>, vector<8x128xf32>,
    %c0_82 = arith.constant 0 : index
    %c0_83 = arith.constant 0 : index
    %179 = vector.load %arg4[%c0_82, %c0_83] : memref<8x128xf32, #tpu.memory_space<vmem>>, vector<8x128xf32>
    tpu.vector_store %arg4[%c0_82, %c0_83], %177 {strides = array<i32>} : memref<8x128xf32, #tpu.memory_space<vmem>>, vector<8x128xf32>,
    %180 = arith.index_cast %c5_i32 : i32 to index
    %c0_84 = arith.constant 0 : index
    %c0_85 = arith.constant 0 : index
    %181 = vector.load %arg3[%180, %c0_84, %c0_85] : memref<8x8x128xf32, #tpu.memory_space<vmem>>, vector<1x8x128xf32>
    %182 = vector.shape_cast %181 : vector<1x8x128xf32> to vector<8x128xf32>
    %183 = vector.shape_cast %177 : vector<8x128xf32> to vector<1x8x128xf32>
    tpu.vector_store %arg3[%180, %c0_84, %c0_85], %183 {strides = array<i32>} : memref<8x8x128xf32, #tpu.memory_space<vmem>>, vector<1x8x128xf32>,
    %c6_i32 = arith.constant 6 : i32
    %c0_86 = arith.constant 0 : index
    %c0_87 = arith.constant 0 : index
    %184 = vector.load %arg4[%c0_86, %c0_87] : memref<8x128xf32, #tpu.memory_space<vmem>>, vector<8x128xf32>
    %c0_88 = arith.constant 0 : index
    %c0_89 = arith.constant 0 : index
    %185 = vector.load %arg5[%c0_88, %c0_89] : memref<8x128xf32, #tpu.memory_space<vmem>>, vector<8x128xf32>
    %186 = arith.index_cast %c6_i32 : i32 to index
    %c0_90 = arith.constant 0 : index
    %c0_91 = arith.constant 0 : index
    %187 = vector.load %arg1[%186, %c0_90, %c0_91] : memref<8x8x512xf32, #tpu.memory_space<vmem>>, vector<1x8x512xf32>
    %188 = vector.shape_cast %187 : vector<1x8x512xf32> to vector<8x512xf32>
    %189 = arith.truncf %184 : vector<8x128xf32> to vector<8x128xbf16>
    %cst_92 = arith.constant dense<0.000000e+00> : vector<8x512xf32>
    %190 = tpu.matmul %189, %3, %cst_92 {dimension_numbers = #tpu.dot_dimension_numbers<[1], [0], [0], [1], [0, 0, 1, 1], [], []>} : vector<8x128xbf16>, vector<128x512xbf16>, vector<8x512xf32> -> vector<8x512xf32>
    %191 = arith.addf %188, %190 : vector<8x512xf32>
    %192 = vector.extract_strided_slice %191 {offsets = [0, 0], sizes = [8, 384], strides = [1, 1]} : vector<8x512xf32> to vector<8x384xf32>
    %193 = arith.negf %192 : vector<8x384xf32>
    %194 = math.exp %193 : vector<8x384xf32>
    %cst_93 = arith.constant 1.000000e+00 : f32
    %195 = vector.broadcast %cst_93 : f32 to vector<8x384xf32>
    %196 = arith.addf %195, %194 : vector<8x384xf32>
    %197 = arith.divf %195, %196 : vector<8x384xf32>
    %198 = vector.extract_strided_slice %197 {offsets = [0, 0], sizes = [8, 128], strides = [1, 1]} : vector<8x384xf32> to vector<8x128xf32>
    %199 = vector.extract_strided_slice %197 {offsets = [0, 128], sizes = [8, 128], strides = [1, 1]} : vector<8x384xf32> to vector<8x128xf32>
    %200 = vector.extract_strided_slice %197 {offsets = [0, 256], sizes = [8, 128], strides = [1, 1]} : vector<8x384xf32> to vector<8x128xf32>
    %201 = vector.extract_strided_slice %191 {offsets = [0, 384], sizes = [8, 128], strides = [1, 1]} : vector<8x512xf32> to vector<8x128xf32>
    %202 = math.tanh %201 : vector<8x128xf32>
    %203 = arith.mulf %199, %185 : vector<8x128xf32>
    %204 = arith.mulf %198, %202 : vector<8x128xf32>
    %205 = arith.addf %203, %204 : vector<8x128xf32>
    %206 = math.tanh %205 : vector<8x128xf32>
    %207 = arith.mulf %200, %206 : vector<8x128xf32>
    %c0_94 = arith.constant 0 : index
    %c0_95 = arith.constant 0 : index
    %208 = vector.load %arg5[%c0_94, %c0_95] : memref<8x128xf32, #tpu.memory_space<vmem>>, vector<8x128xf32>
    tpu.vector_store %arg5[%c0_94, %c0_95], %205 {strides = array<i32>} : memref<8x128xf32, #tpu.memory_space<vmem>>, vector<8x128xf32>,
    %c0_96 = arith.constant 0 : index
    %c0_97 = arith.constant 0 : index
    %209 = vector.load %arg4[%c0_96, %c0_97] : memref<8x128xf32, #tpu.memory_space<vmem>>, vector<8x128xf32>
    tpu.vector_store %arg4[%c0_96, %c0_97], %207 {strides = array<i32>} : memref<8x128xf32, #tpu.memory_space<vmem>>, vector<8x128xf32>,
    %210 = arith.index_cast %c6_i32 : i32 to index
    %c0_98 = arith.constant 0 : index
    %c0_99 = arith.constant 0 : index
    %211 = vector.load %arg3[%210, %c0_98, %c0_99] : memref<8x8x128xf32, #tpu.memory_space<vmem>>, vector<1x8x128xf32>
    %212 = vector.shape_cast %211 : vector<1x8x128xf32> to vector<8x128xf32>
    %213 = vector.shape_cast %207 : vector<8x128xf32> to vector<1x8x128xf32>
    tpu.vector_store %arg3[%210, %c0_98, %c0_99], %213 {strides = array<i32>} : memref<8x8x128xf32, #tpu.memory_space<vmem>>, vector<1x8x128xf32>,
    %c7_i32 = arith.constant 7 : i32
    %c0_100 = arith.constant 0 : index
    %c0_101 = arith.constant 0 : index
    %214 = vector.load %arg4[%c0_100, %c0_101] : memref<8x128xf32, #tpu.memory_space<vmem>>, vector<8x128xf32>
    %c0_102 = arith.constant 0 : index
    %c0_103 = arith.constant 0 : index
    %215 = vector.load %arg5[%c0_102, %c0_103] : memref<8x128xf32, #tpu.memory_space<vmem>>, vector<8x128xf32>
    %216 = arith.index_cast %c7_i32 : i32 to index
    %c0_104 = arith.constant 0 : index
    %c0_105 = arith.constant 0 : index
    %217 = vector.load %arg1[%216, %c0_104, %c0_105] : memref<8x8x512xf32, #tpu.memory_space<vmem>>, vector<1x8x512xf32>
    %218 = vector.shape_cast %217 : vector<1x8x512xf32> to vector<8x512xf32>
    %219 = arith.truncf %214 : vector<8x128xf32> to vector<8x128xbf16>
    %cst_106 = arith.constant dense<0.000000e+00> : vector<8x512xf32>
    %220 = tpu.matmul %219, %3, %cst_106 {dimension_numbers = #tpu.dot_dimension_numbers<[1], [0], [0], [1], [0, 0, 1, 1], [], []>} : vector<8x128xbf16>, vector<128x512xbf16>, vector<8x512xf32> -> vector<8x512xf32>
    %221 = arith.addf %218, %220 : vector<8x512xf32>
    %222 = vector.extract_strided_slice %221 {offsets = [0, 0], sizes = [8, 384], strides = [1, 1]} : vector<8x512xf32> to vector<8x384xf32>
    %223 = arith.negf %222 : vector<8x384xf32>
    %224 = math.exp %223 : vector<8x384xf32>
    %cst_107 = arith.constant 1.000000e+00 : f32
    %225 = vector.broadcast %cst_107 : f32 to vector<8x384xf32>
    %226 = arith.addf %225, %224 : vector<8x384xf32>
    %227 = arith.divf %225, %226 : vector<8x384xf32>
    %228 = vector.extract_strided_slice %227 {offsets = [0, 0], sizes = [8, 128], strides = [1, 1]} : vector<8x384xf32> to vector<8x128xf32>
    %229 = vector.extract_strided_slice %227 {offsets = [0, 128], sizes = [8, 128], strides = [1, 1]} : vector<8x384xf32> to vector<8x128xf32>
    %230 = vector.extract_strided_slice %227 {offsets = [0, 256], sizes = [8, 128], strides = [1, 1]} : vector<8x384xf32> to vector<8x128xf32>
    %231 = vector.extract_strided_slice %221 {offsets = [0, 384], sizes = [8, 128], strides = [1, 1]} : vector<8x512xf32> to vector<8x128xf32>
    %232 = math.tanh %231 : vector<8x128xf32>
    %233 = arith.mulf %229, %215 : vector<8x128xf32>
    %234 = arith.mulf %228, %232 : vector<8x128xf32>
    %235 = arith.addf %233, %234 : vector<8x128xf32>
    %236 = math.tanh %235 : vector<8x128xf32>
    %237 = arith.mulf %230, %236 : vector<8x128xf32>
    %c0_108 = arith.constant 0 : index
    %c0_109 = arith.constant 0 : index
    %238 = vector.load %arg5[%c0_108, %c0_109] : memref<8x128xf32, #tpu.memory_space<vmem>>, vector<8x128xf32>
    tpu.vector_store %arg5[%c0_108, %c0_109], %235 {strides = array<i32>} : memref<8x128xf32, #tpu.memory_space<vmem>>, vector<8x128xf32>,
    %c0_110 = arith.constant 0 : index
    %c0_111 = arith.constant 0 : index
    %239 = vector.load %arg4[%c0_110, %c0_111] : memref<8x128xf32, #tpu.memory_space<vmem>>, vector<8x128xf32>
    tpu.vector_store %arg4[%c0_110, %c0_111], %237 {strides = array<i32>} : memref<8x128xf32, #tpu.memory_space<vmem>>, vector<8x128xf32>,
    %240 = arith.index_cast %c7_i32 : i32 to index
    %c0_112 = arith.constant 0 : index
    %c0_113 = arith.constant 0 : index
    %241 = vector.load %arg3[%240, %c0_112, %c0_113] : memref<8x8x128xf32, #tpu.memory_space<vmem>>, vector<1x8x128xf32>
    %242 = vector.shape_cast %241 : vector<1x8x128xf32> to vector<8x128xf32>
    %243 = vector.shape_cast %237 : vector<8x128xf32> to vector<1x8x128xf32>
    tpu.vector_store %arg3[%240, %c0_112, %c0_113], %243 {strides = array<i32>} : memref<8x8x128xf32, #tpu.memory_space<vmem>>, vector<1x8x128xf32>,
    %c8_i32 = arith.constant 8 : i32
    return
  }
  func.func @transform_0(%arg0: i32) -> (i32, i32, i32) {
    %c0_i32 = arith.constant 0 : i32
    %c0_i32_0 = arith.constant 0 : i32
    %c0_i32_1 = arith.constant 0 : i32
    return %arg0, %c0_i32, %c0_i32_0 : i32, i32, i32
  }
  func.func @transform_1(%arg0: i32) -> (i32, i32) {
    %c0_i32 = arith.constant 0 : i32
    %c0_i32_0 = arith.constant 0 : i32
    %c0_i32_1 = arith.constant 0 : i32
    return %c0_i32, %c0_i32_0 : i32, i32
  }
  func.func @transform_2(%arg0: i32) -> (i32, i32, i32) {
    %c0_i32 = arith.constant 0 : i32
    %c0_i32_0 = arith.constant 0 : i32
    %c0_i32_1 = arith.constant 0 : i32
    return %arg0, %c0_i32, %c0_i32_0 : i32, i32, i32
  }
}

</mosaic_0001>

<bundles_post_ra>
// kernel: tpu_custom_call.1
= control target key start
LH: loop header
LB: loop body
LE: loop exit
PB: predicated region body
PF: predicated region fallthrough
CT: control target
= control target key end

     0   :  { %7 = vsyncpa [#allocation5], 0  ;;  %s1935_s0 = inlined_call_operand.hbm [shape: f32[8,8,512], index: 0, kind: input, shape index: {}]   ;;  %s1936_s1 = inlined_call_operand.hbm [shape: bf16[128,512], index: 1, kind: input, shape index: {}]   ;;  %s1937_s2 = inlined_call_operand.hbm [shape: f32[8,8,128], index: 2, kind: output, shape index: {}]  }
   0x1   :  { %8 = vsyncpa [#allocation8], 0 }
   0x2   :  { %9 = vsyncpa [#allocation6], 0  ;;  %s1572_s9 = smov [#allocation4]  }
   0x3   :  { %s15_s10 = sshll.u32 %s1572_s9, 4  ;;  %s16_s10 = int_to_ptr.vmem [resolvable:$true] %s15_s10 }
   0x4   :  { %s1514_s11 = scalar_lea.vmem %s16_s10, 4096  ;;  %p1519_p1 = scmp.lt.s32.totalorder %s16_s10, %s16_s10 }
   0x5   :  { %p1515_p0 = scmp.ne.s32.totalorder %s16_s10, %s1514_s11  ;;  %p1520_p2 = scmp.lt.s32.totalorder %s1514_s11, %s1514_s11 }
   0x7   :  { %p1521_p3 = por %p1520_p2, %p1519_p1 }
   0x9   :  { %p1522_p4 = pnand %p1521_p3, %p1515_p0 }
   0xb   :  { %1525 = shalt.err (!%p1522_p4)
}
   0xc   :  { %s1573_s12 = smov 512   ;;  %s1574_s13 = smov 32  }
   0xd   :  { %21 = dma.hbm_to_vmem [thread:$0]  %s1935_s0, 4096, %s16_s10, [#allocation5], %s1573_s12, %s1573_s12, %s1574_s13  }
   0xe   :  { %s1575_s16 = smov [#allocation7]  }
   0xf   :  { %s27_s17 = sshll.u32 %s1575_s16, 4  ;;  %s28_s17 = int_to_ptr.vmem [resolvable:$true] %s27_s17 }
  0x10   :  { %s1534_s18 = scalar_lea.vmem %s28_s17, 4096  ;;  %p1539_p6 = scmp.lt.s32.totalorder %s28_s17, %s28_s17 }
  0x11   :  { %p1535_p5 = scmp.ne.s32.totalorder %s28_s17, %s1534_s18  ;;  %p1540_p7 = scmp.lt.s32.totalorder %s1534_s18, %s1534_s18 }
  0x13   :  { %p1541_p8 = por %p1540_p7, %p1539_p6 }
  0x15   :  { %p1542_p9 = pnand %p1541_p8, %p1535_p5 }
  0x17   :  { %1545 = shalt.err (!%p1542_p9)
}
  0x18   :  { %s1576_s19 = smov 256   ;;  %s1577_s20 = smov 16  }
  0x19   :  { %33 = dma.hbm_to_vmem [thread:$0]  %s1936_s1, 4096, %s28_s17, [#allocation8], %s1576_s19, %s1576_s19, %s1577_s20  }
  0x1a   :  { %1566 = dma.done.wait [#allocation5], 4096  }
  0x1b   :  { %1567 = vsyncadd [#allocation5], 4294963200 }
  0x1c   :  { %1568 = dma.done.wait [#allocation8], 4096  }
  0x1d   :  { %1569 = vsyncadd [#allocation8], 4294963200  ;;  %v1578_v0 = vmov 0   ;;  %v1606_v1 = vld [vmem:[#allocation7 + $0xe4] ss:$16 sps:$4 sm:$0xff]   ;;  %v1579_v33 = vmov 0.0|0.0  }
  0x1e   :  { %278 = vmatprep.mubr.bf16.mxu0 %v1578_v0  ;;  %319 = vmatprep.mubr.bf16.mxu1 %v1578_v0  ;;  %v1608_v2 = vld [vmem:[#allocation7 + $0xe0] ss:$16 sps:$4 sm:$0xff]   ;;  %v1611_v3 = vld [vmem:[#allocation7 + $0xc4] ss:$16 sps:$4 sm:$0xff]   ;;  %v1619_v6 = vld [vmem:[#allocation7 + $0xec] ss:$16 sps:$4 sm:$0xff]  }
  0x1f   :  { %246 = vmatprep.subr.bf16.mxu0 %v1606_v1  ;;  %v1614_v4 = vld [vmem:[#allocation7 + $0xc0] ss:$16 sps:$4 sm:$0xff]   ;;  %v1617_v5 = vld [vmem:[#allocation7 + $0xa4] ss:$16 sps:$4 sm:$0xff]   ;;  %v1621_v7 = vld [vmem:[#allocation7 + $0xe8] ss:$16 sps:$4 sm:$0xff]   ;;  %287 = vmatprep.subr.bf16.mxu1 %v1619_v6 }
  0x20   :  { %247 = vmatpush1.bf16.msra.mxu0 %v1608_v2  ;;  %v1624_v8 = vld [vmem:[#allocation7 + $0xa0] ss:$16 sps:$4 sm:$0xff]   ;;  %v1628_v9 = vld [vmem:[#allocation7 + $0x84] ss:$16 sps:$4 sm:$0xff]   ;;  %288 = vmatpush1.bf16.msra.mxu1 %v1621_v7  ;;  %v1631_v10 = vld [vmem:[#allocation7 + $0xcc] ss:$16 sps:$4 sm:$0xff]  }
  0x21   :  { %248 = vmatprep.subr.bf16.mxu0 %v1611_v3  ;;  %v1633_v11 = vld [vmem:[#allocation7 + $0xc8] ss:$16 sps:$4 sm:$0xff]   ;;  %289 = vmatprep.subr.bf16.mxu1 %v1631_v10  ;;  %v1637_v12 = vld [vmem:[#allocation7 + $0x80] ss:$16 sps:$4 sm:$0xff]   ;;  %v1639_v13 = vld [vmem:[#allocation7 + $0x64] ss:$16 sps:$4 sm:$0xff]  }
  0x22   :  { %v1641_v14 = vld [vmem:[#allocation7 + $0xac] ss:$16 sps:$4 sm:$0xff]   ;;  %v1645_v15 = vld [vmem:[#allocation7 + $0xa8] ss:$16 sps:$4 sm:$0xff]   ;;  %v1651_v17 = vld [vmem:[#allocation7 + $0x60] ss:$16 sps:$4 sm:$0xff]  }
  0x23   :  { %v1648_v16 = vld [vmem:[#allocation7 + $0x8c] ss:$16 sps:$4 sm:$0xff]   ;;  %v1654_v18 = vld [vmem:[#allocation7 + $0x44] ss:$16 sps:$4 sm:$0xff]   ;;  %v1657_v19 = vld [vmem:[#allocation7 + $0x88] ss:$16 sps:$4 sm:$0xff]  }
  0x24   :  { %249 = vmatpush1.bf16.msra.mxu0 %v1614_v4  ;;  %290 = vmatpush1.bf16.msra.mxu1 %v1633_v11  ;;  %v1660_v20 = vld [vmem:[#allocation7 + $0x6c] ss:$16 sps:$4 sm:$0xff]   ;;  %v1663_v21 = vld [vmem:[#allocation7 + $0x40] ss:$16 sps:$4 sm:$0xff]   ;;  %v1665_v22 = vld [vmem:[#allocation7 + $0x24] ss:$16 sps:$4 sm:$0xff]  }
  0x25   :  { %250 = vmatprep.subr.bf16.mxu0 %v1617_v5  ;;  %291 = vmatprep.subr.bf16.mxu1 %v1641_v14  ;;  %v1669_v23 = vld [vmem:[#allocation7 + $0x68] ss:$16 sps:$4 sm:$0xff]   ;;  %v1672_v24 = vld [vmem:[#allocation7 + $0x4c] ss:$16 sps:$4 sm:$0xff]   ;;  %v1675_v25 = vld [vmem:[#allocation7 + $0x20] ss:$16 sps:$4 sm:$0xff]  }
  0x26   :  { %v1678_v26 = vld [vmem:[#allocation7 + $0x4] ss:$16 sps:$4 sm:$0xff]   ;;  %v1681_v27 = vld [vmem:[#allocation7 + $0x48] ss:$16 sps:$4 sm:$0xff]   ;;  %v1684_v28 = vld [vmem:[#allocation7 + $0x2c] ss:$16 sps:$4 sm:$0xff]  }
  0x27   :  { %v1687_v29 = vld [vmem:[#allocation7] ss:$16 sps:$4 sm:$0xff]   ;;  %v1691_v30 = vld [vmem:[#allocation7 + $0x28] ss:$16 sps:$4 sm:$0xff]   ;;  %v1694_v31 = vld [vmem:[#allocation7 + $0xc] ss:$16 sps:$4 sm:$0xff]  }
  0x28   :  { %251 = vmatpush1.bf16.msra.mxu0 %v1624_v8  ;;  %292 = vmatpush1.bf16.msra.mxu1 %v1645_v15  ;;  %v1698_v32 = vld [vmem:[#allocation7 + $0x8] ss:$16 sps:$4 sm:$0xff]   ;;  %v81_v34 = vld [vmem:[#allocation4] sm:$0xff]  ;;  %v83_v46 = vld [vmem:[#allocation4 + $0x10] sm:$0xff]  ;;  %s1580_s0 = smov [#allocation9]  }
  0x29   :  { %252 = vmatprep.subr.bf16.mxu0 %v1628_v9  ;;  %293 = vmatprep.subr.bf16.mxu1 %v1648_v16  ;;  %v82_v36 = vld [vmem:[#allocation4 + $0x8] sm:$0xff]  ;;  %v84_v50 = vld [vmem:[#allocation4 + $0x18] sm:$0xff]  ;;  %s1218_s1 = sshll.u32 %s1580_s0, 4  ;;  %s1219_s1 = int_to_ptr.vmem [resolvable:$true] %s1218_s1 }
  0x2a   :  { %s1546_s23 = scalar_lea.vmem %s1219_s1, 1024  ;;  %p1551_p11 = scmp.lt.s32.totalorder %s1219_s1, %s1219_s1 }
  0x2b   :  { %p1547_p10 = scmp.ne.s32.totalorder %s1219_s1, %s1546_s23  ;;  %p1552_p12 = scmp.lt.s32.totalorder %s1546_s23, %s1546_s23 }
  0x2c   :  { %253 = vmatpush1.bf16.msra.mxu0 %v1637_v12  ;;  %294 = vmatpush1.bf16.msra.mxu1 %v1657_v19 }
  0x2d   :  { %254 = vmatprep.subr.bf16.mxu0 %v1639_v13  ;;  %295 = vmatprep.subr.bf16.mxu1 %v1660_v20  ;;  %p1553_p13 = por %p1552_p12, %p1551_p11 }
  0x2f   :  { %p1554_p0 = pnand %p1553_p13, %p1547_p10 }
  0x30   :  { %255 = vmatpush1.bf16.msra.mxu0 %v1651_v17  ;;  %296 = vmatpush1.bf16.msra.mxu1 %v1669_v23 }
  0x31   :  { %256 = vmatprep.subr.bf16.mxu0 %v1654_v18  ;;  %297 = vmatprep.subr.bf16.mxu1 %v1672_v24 }
  0x34   :  { %257 = vmatpush1.bf16.msra.mxu0 %v1663_v21  ;;  %298 = vmatpush1.bf16.msra.mxu1 %v1681_v27 }
  0x35   :  { %258 = vmatprep.subr.bf16.mxu0 %v1665_v22  ;;  %299 = vmatprep.subr.bf16.mxu1 %v1684_v28 }
  0x38   :  { %259 = vmatpush1.bf16.msra.mxu0 %v1675_v25  ;;  %300 = vmatpush1.bf16.msra.mxu1 %v1691_v30 }
  0x39   :  { %260 = vmatprep.subr.bf16.mxu0 %v1678_v26  ;;  %301 = vmatprep.subr.bf16.mxu1 %v1694_v31 }
  0x3c   :  { %261 = vmatpush1.bf16.msra.mxu0 %v1687_v29  ;;  %302 = vmatpush1.bf16.msra.mxu1 %v1698_v32 }
  0x3d   :  { %367 = vmatprep.subr.bf16.mxu0 %v1606_v1  ;;  %408 = vmatprep.subr.bf16.mxu1 %v1619_v6 }
  0x3f   :  { %279 = vmatmul.mubr.bf16.vlgmr.msra.gmra.mxu0 %v1579_v33  ;;  %320 = vmatmul.mubr.bf16.vlgmr.msra.gmra.mxu1 %v1579_v33 }
  0x40   :  { %368 = vmatpush1.bf16.msra.mxu0 %v1608_v2  ;;  %399 = vmatprep.mubr.bf16.mxu0 %v1578_v0 }
  0x41   :  { %369 = vmatprep.subr.bf16.mxu0 %v1611_v3  ;;  %409 = vmatpush1.bf16.msra.mxu1 %v1621_v7 }
  0x42   :  { %410 = vmatprep.subr.bf16.mxu1 %v1631_v10  ;;  %440 = vmatprep.mubr.bf16.mxu1 %v1578_v0 }
  0x44   :  { %370 = vmatpush1.bf16.msra.mxu0 %v1614_v4 }
  0x45   :  { %371 = vmatprep.subr.bf16.mxu0 %v1617_v5  ;;  %411 = vmatpush1.bf16.msra.mxu1 %v1633_v11 }
  0x46   :  { %412 = vmatprep.subr.bf16.mxu1 %v1641_v14 }
  0x48   :  { %372 = vmatpush1.bf16.msra.mxu0 %v1624_v8 }
  0x49   :  { %373 = vmatprep.subr.bf16.mxu0 %v1628_v9  ;;  %413 = vmatpush1.bf16.msra.mxu1 %v1645_v15 }
  0x4a   :  { %414 = vmatprep.subr.bf16.mxu1 %v1648_v16 }
  0x4c   :  { %374 = vmatpush1.bf16.msra.mxu0 %v1637_v12 }
  0x4d   :  { %375 = vmatprep.subr.bf16.mxu0 %v1639_v13  ;;  %415 = vmatpush1.bf16.msra.mxu1 %v1657_v19 }
  0x4e   :  { %416 = vmatprep.subr.bf16.mxu1 %v1660_v20 }
  0x50   :  { %376 = vmatpush1.bf16.msra.mxu0 %v1651_v17 }
  0x51   :  { %377 = vmatprep.subr.bf16.mxu0 %v1654_v18  ;;  %417 = vmatpush1.bf16.msra.mxu1 %v1669_v23 }
  0x52   :  { %418 = vmatprep.subr.bf16.mxu1 %v1672_v24 }
  0x54   :  { %378 = vmatpush1.bf16.msra.mxu0 %v1663_v21 }
  0x55   :  { %379 = vmatprep.subr.bf16.mxu0 %v1665_v22  ;;  %419 = vmatpush1.bf16.msra.mxu1 %v1681_v27 }
  0x56   :  { %420 = vmatprep.subr.bf16.mxu1 %v1684_v28 }
  0x58   :  { %380 = vmatpush1.bf16.msra.mxu0 %v1675_v25 }
  0x59   :  { %381 = vmatprep.subr.bf16.mxu0 %v1678_v26  ;;  %421 = vmatpush1.bf16.msra.mxu1 %v1691_v30 }
  0x5a   :  { %422 = vmatprep.subr.bf16.mxu1 %v1694_v31 }
  0x5c   :  { %382 = vmatpush1.bf16.msra.mxu0 %v1687_v29 }
  0x5d   :  { %489 = vmatprep.subr.bf16.mxu0 %v1606_v1  ;;  %423 = vmatpush1.bf16.msra.mxu1 %v1698_v32 }
  0x5e   :  { %530 = vmatprep.subr.bf16.mxu1 %v1619_v6 }
  0xff   :  { %v280_v35 = vpop.f32.mrf.mxu0  ;;  %v321_v43 = vpop.f32.mrf.mxu1 }
 0x100   :  { %v328_v37 = vadd.f32 %v280_v35, %v81_v34  ;;  %v330_v48 = vadd.f32 %v321_v43, %v83_v46 }
 0x101   :  { %v282_v38 = vpop.f32.mrf.mxu0  ;;  %v323_v45 = vpop.f32.mrf.mxu1 }
 0x102   :  { %v1263_v39 = vmul.f32 -1.442695, %v328_v37  ;;  %v329_v40 = vadd.f32 %v282_v38, %v82_v36  ;;  %v1265_v51 = vmul.f32 -1.442695, %v330_v48  ;;  %v331_v52 = vadd.f32 %v323_v45, %v84_v50  ;;  %v362_v38 = vld [vmem:[#allocation4 + $0x20] sm:$0xff] }
 0x103   :  { %v284_v41 = vpop.f32.mrf.mxu0  ;;  %v325_v47 = vpop.f32.mrf.mxu1 }
 0x104   :  { %1346 = vpow2.f32 %v1263_v39  ;;  %v1264_v42 = vmul.f32 -1.442695, %v329_v40  ;;  %v363_v41 = vld [vmem:[#allocation4 + $0x28] sm:$0xff] }
 0x105   :  { %v285_v44 = vpop.f32.mrf.mxu0  ;;  %v326_v49 = vpop.f32.mrf.mxu1 }
 0x106   :  { %1348 = vpow2.f32 %v1264_v42 }
 0x107   :  { %1350 = vpow2.f32 %v1265_v51 }
 0x108   :  { %1352 = vtanh.f32 %v331_v52  ;;  %v364_v52 = vld [vmem:[#allocation4 + $0x30] sm:$0xff] }
 0x111   :  { %v1347_v53 = vpop.eup %1346 }
 0x112   :  { %v341_v54 = vadd.f32 1.0, %v1347_v53 }
 0x113   :  { %v1349_v55 = vpop.eup %1348 }
 0x114   :  { %1354 = vrcp.f32 %v341_v54  ;;  %v342_v56 = vadd.f32 1.0, %v1349_v55  ;;  %v1351_v57 = vpop.eup %1350  ;;  %v365_v54 = vld [vmem:[#allocation4 + $0x38] sm:$0xff] }
 0x115   :  { %v1353_v58 = vpop.eup %1352  ;;  %v343_v61 = vadd.f32 1.0, %v1351_v57 }
 0x116   :  { %1356 = vrcp.f32 %v342_v56 }
 0x117   :  { %1358 = vrcp.f32 %v343_v61 }
 0x121   :  { %v1355_v59 = vpop.eup %1354 }
 0x122   :  { %v352_v63 = vmul.f32 %v1355_v59, %v1353_v58 }
 0x123   :  { %v1357_v60 = vpop.eup %1356 }
 0x124   :  { %v351_v62 = vmul.f32 0.0, %v1357_v60  ;;  %v1359_v34 = vpop.eup %1358 }
 0x126   :  { %v1738_v33 = vadd.f32 %v352_v63, %v351_v62 }
 0x128   :  { %1360 = vtanh.f32 %v1738_v33 }
 0x135   :  { %v1361_v35 = vpop.eup %1360 }
 0x136   :  { %v355_v36 = vmul.f32 %v1361_v35, %v1359_v34 }
 0x138   :  { %358 = vst [vmem:[#allocation9] sm:$0xff] %v355_v36  ;;  %v366_v37 = vpack.c.bf16 %v355_v36, %v355_v36 }
 0x13a   :  { %400 = vmatmul.mubr.bf16.vlgmr.msra.gmra.mxu0 %v366_v37  ;;  %441 = vmatmul.mubr.bf16.vlgmr.msra.gmra.mxu1 %v366_v37 }
 0x13b   :  { %490 = vmatpush1.bf16.msra.mxu0 %v1608_v2  ;;  %531 = vmatpush1.bf16.msra.mxu1 %v1621_v7 }
 0x13c   :  { %491 = vmatprep.subr.bf16.mxu0 %v1611_v3  ;;  %532 = vmatprep.subr.bf16.mxu1 %v1631_v10 }
 0x13d   :  { %521 = vmatprep.mubr.bf16.mxu0 %v1578_v0  ;;  %562 = vmatprep.mubr.bf16.mxu1 %v1578_v0 }
 0x13f   :  { %492 = vmatpush1.bf16.msra.mxu0 %v1614_v4  ;;  %533 = vmatpush1.bf16.msra.mxu1 %v1633_v11 }
 0x140   :  { %493 = vmatprep.subr.bf16.mxu0 %v1617_v5  ;;  %534 = vmatprep.subr.bf16.mxu1 %v1641_v14 }
 0x143   :  { %494 = vmatpush1.bf16.msra.mxu0 %v1624_v8  ;;  %535 = vmatpush1.bf16.msra.mxu1 %v1645_v15 }
 0x144   :  { %495 = vmatprep.subr.bf16.mxu0 %v1628_v9  ;;  %536 = vmatprep.subr.bf16.mxu1 %v1648_v16 }
 0x147   :  { %496 = vmatpush1.bf16.msra.mxu0 %v1637_v12  ;;  %537 = vmatpush1.bf16.msra.mxu1 %v1657_v19 }
 0x148   :  { %497 = vmatprep.subr.bf16.mxu0 %v1639_v13  ;;  %538 = vmatprep.subr.bf16.mxu1 %v1660_v20 }
 0x14b   :  { %498 = vmatpush1.bf16.msra.mxu0 %v1651_v17  ;;  %539 = vmatpush1.bf16.msra.mxu1 %v1669_v23 }
 0x14c   :  { %499 = vmatprep.subr.bf16.mxu0 %v1654_v18  ;;  %540 = vmatprep.subr.bf16.mxu1 %v1672_v24 }
 0x14f   :  { %500 = vmatpush1.bf16.msra.mxu0 %v1663_v21  ;;  %541 = vmatpush1.bf16.msra.mxu1 %v1681_v27 }
 0x150   :  { %501 = vmatprep.subr.bf16.mxu0 %v1665_v22  ;;  %542 = vmatprep.subr.bf16.mxu1 %v1684_v28 }
 0x153   :  { %502 = vmatpush1.bf16.msra.mxu0 %v1675_v25  ;;  %543 = vmatpush1.bf16.msra.mxu1 %v1691_v30 }
 0x154   :  { %503 = vmatprep.subr.bf16.mxu0 %v1678_v26  ;;  %544 = vmatprep.subr.bf16.mxu1 %v1694_v31 }
 0x157   :  { %504 = vmatpush1.bf16.msra.mxu0 %v1687_v29  ;;  %545 = vmatpush1.bf16.msra.mxu1 %v1698_v32 }
 0x158   :  { %611 = vmatprep.subr.bf16.mxu0 %v1606_v1  ;;  %652 = vmatprep.subr.bf16.mxu1 %v1619_v6 }
 0x1fa   :  { %v401_v39 = vpop.f32.mrf.mxu0  ;;  %v442_v40 = vpop.f32.mrf.mxu1 }
 0x1fb   :  { %v449_v42 = vadd.f32 %v401_v39, %v362_v38  ;;  %v451_v53 = vadd.f32 %v442_v40, %v364_v52 }
 0x1fc   :  { %v403_v43 = vpop.f32.mrf.mxu0  ;;  %v444_v44 = vpop.f32.mrf.mxu1 }
 0x1fd   :  { %v1266_v45 = vmul.f32 -1.442695, %v449_v42  ;;  %v450_v46 = vadd.f32 %v403_v43, %v363_v41  ;;  %v1268_v55 = vmul.f32 -1.442695, %v451_v53  ;;  %v452_v57 = vadd.f32 %v444_v44, %v365_v54 }
 0x1fe   :  { %v405_v47 = vpop.f32.mrf.mxu0  ;;  %v446_v48 = vpop.f32.mrf.mxu1 }
 0x1ff   :  { %1362 = vpow2.f32 %v1266_v45  ;;  %v1267_v49 = vmul.f32 -1.442695, %v450_v46  ;;  %v485_v45 = vld [vmem:[#allocation4 + $0x48] sm:$0xff] }
 0x200   :  { %v406_v50 = vpop.f32.mrf.mxu0  ;;  %v447_v51 = vpop.f32.mrf.mxu1 }
 0x201   :  { %1364 = vpow2.f32 %v1267_v49 }
 0x202   :  { %1366 = vpow2.f32 %v1268_v55 }
 0x20c   :  { %v1363_v56 = vpop.eup %1362 }
 0x20d   :  { %v462_v58 = vadd.f32 1.0, %v1363_v56  ;;  %v486_v56 = vld [vmem:[#allocation4 + $0x50] sm:$0xff] }
 0x20e   :  { %v1365_v59 = vpop.eup %1364 }
 0x20f   :  { %1368 = vrcp.f32 %v462_v58  ;;  %v463_v60 = vadd.f32 1.0, %v1365_v59  ;;  %v1367_v61 = vpop.eup %1366  ;;  %v487_v58 = vld [vmem:[#allocation4 + $0x58] sm:$0xff] }
 0x210   :  { %1370 = vtanh.f32 %v452_v57  ;;  %v464_v35 = vadd.f32 1.0, %v1367_v61 }
 0x211   :  { %1372 = vrcp.f32 %v463_v60 }
 0x212   :  { %1374 = vrcp.f32 %v464_v35 }
 0x21c   :  { %v1369_v62 = vpop.eup %1368 }
 0x21d   :  { %v1371_v63 = vpop.eup %1370 }
 0x21e   :  { %v1373_v34 = vpop.eup %1372  ;;  %v473_v37 = vmul.f32 %v1371_v63, %v1369_v62 }
 0x21f   :  { %v472_v36 = vmul.f32 %v1373_v34, %v1738_v33  ;;  %v1375_v39 = vpop.eup %1374  ;;  %v484_v33 = vld [vmem:[#allocation4 + $0x40] sm:$0xff] }
 0x221   :  { %v1776_v38 = vadd.f32 %v473_v37, %v472_v36 }
 0x223   :  { %1376 = vtanh.f32 %v1776_v38 }
 0x230   :  { %v1377_v40 = vpop.eup %1376 }
 0x231   :  { %v476_v41 = vmul.f32 %v1377_v40, %v1375_v39 }
 0x233   :  { %480 = vst [vmem:[#allocation9 + $0x8] sm:$0xff] %v476_v41  ;;  %v488_v42 = vpack.c.bf16 %v476_v41, %v476_v41 }
 0x235   :  { %522 = vmatmul.mubr.bf16.vlgmr.msra.gmra.mxu0 %v488_v42  ;;  %563 = vmatmul.mubr.bf16.vlgmr.msra.gmra.mxu1 %v488_v42 }
 0x236   :  { %612 = vmatpush1.bf16.msra.mxu0 %v1608_v2  ;;  %653 = vmatpush1.bf16.msra.mxu1 %v1621_v7 }
 0x237   :  { %613 = vmatprep.subr.bf16.mxu0 %v1611_v3  ;;  %654 = vmatprep.subr.bf16.mxu1 %v1631_v10 }
 0x238   :  { %643 = vmatprep.mubr.bf16.mxu0 %v1578_v0  ;;  %684 = vmatprep.mubr.bf16.mxu1 %v1578_v0 }
 0x23a   :  { %614 = vmatpush1.bf16.msra.mxu0 %v1614_v4  ;;  %655 = vmatpush1.bf16.msra.mxu1 %v1633_v11 }
 0x23b   :  { %615 = vmatprep.subr.bf16.mxu0 %v1617_v5  ;;  %656 = vmatprep.subr.bf16.mxu1 %v1641_v14 }
 0x23e   :  { %616 = vmatpush1.bf16.msra.mxu0 %v1624_v8  ;;  %657 = vmatpush1.bf16.msra.mxu1 %v1645_v15 }
 0x23f   :  { %617 = vmatprep.subr.bf16.mxu0 %v1628_v9  ;;  %658 = vmatprep.subr.bf16.mxu1 %v1648_v16 }
 0x242   :  { %618 = vmatpush1.bf16.msra.mxu0 %v1637_v12  ;;  %659 = vmatpush1.bf16.msra.mxu1 %v1657_v19 }
 0x243   :  { %619 = vmatprep.subr.bf16.mxu0 %v1639_v13  ;;  %660 = vmatprep.subr.bf16.mxu1 %v1660_v20 }
 0x246   :  { %620 = vmatpush1.bf16.msra.mxu0 %v1651_v17  ;;  %661 = vmatpush1.bf16.msra.mxu1 %v1669_v23 }
 0x247   :  { %621 = vmatprep.subr.bf16.mxu0 %v1654_v18  ;;  %662 = vmatprep.subr.bf16.mxu1 %v1672_v24 }
 0x24a   :  { %622 = vmatpush1.bf16.msra.mxu0 %v1663_v21  ;;  %663 = vmatpush1.bf16.msra.mxu1 %v1681_v27 }
 0x24b   :  { %623 = vmatprep.subr.bf16.mxu0 %v1665_v22  ;;  %664 = vmatprep.subr.bf16.mxu1 %v1684_v28 }
 0x24e   :  { %624 = vmatpush1.bf16.msra.mxu0 %v1675_v25  ;;  %665 = vmatpush1.bf16.msra.mxu1 %v1691_v30 }
 0x24f   :  { %625 = vmatprep.subr.bf16.mxu0 %v1678_v26  ;;  %666 = vmatprep.subr.bf16.mxu1 %v1694_v31 }
 0x252   :  { %626 = vmatpush1.bf16.msra.mxu0 %v1687_v29  ;;  %667 = vmatpush1.bf16.msra.mxu1 %v1698_v32 }
 0x253   :  { %733 = vmatprep.subr.bf16.mxu0 %v1606_v1  ;;  %774 = vmatprep.subr.bf16.mxu1 %v1619_v6 }
 0x2f5   :  { %v523_v43 = vpop.f32.mrf.mxu0  ;;  %v564_v44 = vpop.f32.mrf.mxu1 }
 0x2f6   :  { %v571_v46 = vadd.f32 %v523_v43, %v484_v33  ;;  %v573_v57 = vadd.f32 %v564_v44, %v486_v56 }
 0x2f7   :  { %v525_v47 = vpop.f32.mrf.mxu0  ;;  %v566_v48 = vpop.f32.mrf.mxu1 }
 0x2f8   :  { %v1269_v49 = vmul.f32 -1.442695, %v571_v46  ;;  %v572_v50 = vadd.f32 %v525_v47, %v485_v45  ;;  %v1271_v59 = vmul.f32 -1.442695, %v573_v57  ;;  %v574_v61 = vadd.f32 %v566_v48, %v487_v58 }
 0x2f9   :  { %v527_v51 = vpop.f32.mrf.mxu0  ;;  %v568_v52 = vpop.f32.mrf.mxu1 }
 0x2fa   :  { %1378 = vpow2.f32 %v1269_v49  ;;  %v1270_v53 = vmul.f32 -1.442695, %v572_v50  ;;  %v607_v49 = vld [vmem:[#allocation4 + $0x68] sm:$0xff] }
 0x2fb   :  { %v528_v54 = vpop.f32.mrf.mxu0  ;;  %v569_v55 = vpop.f32.mrf.mxu1 }
 0x2fc   :  { %1380 = vpow2.f32 %v1270_v53 }
 0x2fd   :  { %1382 = vpow2.f32 %v1271_v59 }
 0x307   :  { %v1379_v60 = vpop.eup %1378 }
 0x308   :  { %v584_v62 = vadd.f32 1.0, %v1379_v60  ;;  %v608_v60 = vld [vmem:[#allocation4 + $0x70] sm:$0xff] }
 0x309   :  { %v1381_v63 = vpop.eup %1380 }
 0x30a   :  { %1384 = vrcp.f32 %v584_v62  ;;  %v585_v34 = vadd.f32 1.0, %v1381_v63  ;;  %v1383_v35 = vpop.eup %1382  ;;  %v609_v62 = vld [vmem:[#allocation4 + $0x78] sm:$0xff] }
 0x30b   :  { %1386 = vtanh.f32 %v574_v61  ;;  %v586_v40 = vadd.f32 1.0, %v1383_v35 }
 0x30c   :  { %1388 = vrcp.f32 %v585_v34 }
 0x30d   :  { %1390 = vrcp.f32 %v586_v40 }
 0x317   :  { %v1385_v36 = vpop.eup %1384 }
 0x318   :  { %v1387_v37 = vpop.eup %1386 }
 0x319   :  { %v1389_v39 = vpop.eup %1388  ;;  %v595_v42 = vmul.f32 %v1387_v37, %v1385_v36 }
 0x31a   :  { %v594_v41 = vmul.f32 %v1389_v39, %v1776_v38  ;;  %v1391_v43 = vpop.eup %1390  ;;  %v606_v38 = vld [vmem:[#allocation4 + $0x60] sm:$0xff] }
 0x31c   :  { %v1814_v33 = vadd.f32 %v595_v42, %v594_v41 }
 0x31e   :  { %1392 = vtanh.f32 %v1814_v33 }
 0x32b   :  { %v1393_v44 = vpop.eup %1392 }
 0x32c   :  { %v598_v45 = vmul.f32 %v1393_v44, %v1391_v43 }
 0x32e   :  { %602 = vst [vmem:[#allocation9 + $0x10] sm:$0xff] %v598_v45  ;;  %v610_v46 = vpack.c.bf16 %v598_v45, %v598_v45 }
 0x330   :  { %644 = vmatmul.mubr.bf16.vlgmr.msra.gmra.mxu0 %v610_v46  ;;  %685 = vmatmul.mubr.bf16.vlgmr.msra.gmra.mxu1 %v610_v46 }
 0x331   :  { %734 = vmatpush1.bf16.msra.mxu0 %v1608_v2  ;;  %775 = vmatpush1.bf16.msra.mxu1 %v1621_v7 }
 0x332   :  { %735 = vmatprep.subr.bf16.mxu0 %v1611_v3  ;;  %776 = vmatprep.subr.bf16.mxu1 %v1631_v10 }
 0x333   :  { %765 = vmatprep.mubr.bf16.mxu0 %v1578_v0  ;;  %806 = vmatprep.mubr.bf16.mxu1 %v1578_v0 }
 0x335   :  { %736 = vmatpush1.bf16.msra.mxu0 %v1614_v4  ;;  %777 = vmatpush1.bf16.msra.mxu1 %v1633_v11 }
 0x336   :  { %737 = vmatprep.subr.bf16.mxu0 %v1617_v5  ;;  %778 = vmatprep.subr.bf16.mxu1 %v1641_v14 }
 0x339   :  { %738 = vmatpush1.bf16.msra.mxu0 %v1624_v8  ;;  %779 = vmatpush1.bf16.msra.mxu1 %v1645_v15 }
 0x33a   :  { %739 = vmatprep.subr.bf16.mxu0 %v1628_v9  ;;  %780 = vmatprep.subr.bf16.mxu1 %v1648_v16 }
 0x33d   :  { %740 = vmatpush1.bf16.msra.mxu0 %v1637_v12  ;;  %781 = vmatpush1.bf16.msra.mxu1 %v1657_v19 }
 0x33e   :  { %741 = vmatprep.subr.bf16.mxu0 %v1639_v13  ;;  %782 = vmatprep.subr.bf16.mxu1 %v1660_v20 }
 0x341   :  { %742 = vmatpush1.bf16.msra.mxu0 %v1651_v17  ;;  %783 = vmatpush1.bf16.msra.mxu1 %v1669_v23 }
 0x342   :  { %743 = vmatprep.subr.bf16.mxu0 %v1654_v18  ;;  %784 = vmatprep.subr.bf16.mxu1 %v1672_v24 }
 0x345   :  { %744 = vmatpush1.bf16.msra.mxu0 %v1663_v21  ;;  %785 = vmatpush1.bf16.msra.mxu1 %v1681_v27 }
 0x346   :  { %745 = vmatprep.subr.bf16.mxu0 %v1665_v22  ;;  %786 = vmatprep.subr.bf16.mxu1 %v1684_v28 }
 0x349   :  { %746 = vmatpush1.bf16.msra.mxu0 %v1675_v25  ;;  %787 = vmatpush1.bf16.msra.mxu1 %v1691_v30 }
 0x34a   :  { %747 = vmatprep.subr.bf16.mxu0 %v1678_v26  ;;  %788 = vmatprep.subr.bf16.mxu1 %v1694_v31 }
 0x34d   :  { %748 = vmatpush1.bf16.msra.mxu0 %v1687_v29  ;;  %789 = vmatpush1.bf16.msra.mxu1 %v1698_v32 }
 0x34e   :  { %855 = vmatprep.subr.bf16.mxu0 %v1606_v1  ;;  %896 = vmatprep.subr.bf16.mxu1 %v1619_v6 }
 0x3f0   :  { %v645_v47 = vpop.f32.mrf.mxu0  ;;  %v686_v48 = vpop.f32.mrf.mxu1 }
 0x3f1   :  { %v693_v50 = vadd.f32 %v645_v47, %v606_v38  ;;  %v695_v61 = vadd.f32 %v686_v48, %v608_v60 }
 0x3f2   :  { %v647_v51 = vpop.f32.mrf.mxu0  ;;  %v688_v52 = vpop.f32.mrf.mxu1 }
 0x3f3   :  { %v1272_v53 = vmul.f32 -1.442695, %v693_v50  ;;  %v694_v54 = vadd.f32 %v647_v51, %v607_v49  ;;  %v1274_v63 = vmul.f32 -1.442695, %v695_v61  ;;  %v696_v35 = vadd.f32 %v688_v52, %v609_v62 }
 0x3f4   :  { %v649_v55 = vpop.f32.mrf.mxu0  ;;  %v690_v56 = vpop.f32.mrf.mxu1 }
 0x3f5   :  { %1394 = vpow2.f32 %v1272_v53  ;;  %v1273_v57 = vmul.f32 -1.442695, %v694_v54  ;;  %v729_v53 = vld [vmem:[#allocation4 + $0x88] sm:$0xff] }
 0x3f6   :  { %v650_v58 = vpop.f32.mrf.mxu0  ;;  %v691_v59 = vpop.f32.mrf.mxu1 }
 0x3f7   :  { %1396 = vpow2.f32 %v1273_v57 }
 0x3f8   :  { %1398 = vpow2.f32 %v1274_v63 }
 0x402   :  { %v1395_v34 = vpop.eup %1394 }
 0x403   :  { %v706_v36 = vadd.f32 1.0, %v1395_v34  ;;  %v730_v34 = vld [vmem:[#allocation4 + $0x90] sm:$0xff] }
 0x404   :  { %v1397_v37 = vpop.eup %1396 }
 0x405   :  { %1400 = vrcp.f32 %v706_v36  ;;  %v707_v39 = vadd.f32 1.0, %v1397_v37  ;;  %v1399_v40 = vpop.eup %1398 }
 0x406   :  { %1402 = vtanh.f32 %v696_v35  ;;  %v708_v44 = vadd.f32 1.0, %v1399_v40  ;;  %v731_v35 = vld [vmem:[#allocation4 + $0x98] sm:$0xff] }
 0x407   :  { %1404 = vrcp.f32 %v707_v39 }
 0x408   :  { %1406 = vrcp.f32 %v708_v44 }
 0x412   :  { %v1401_v41 = vpop.eup %1400 }
 0x413   :  { %v1403_v42 = vpop.eup %1402 }
 0x414   :  { %v1405_v43 = vpop.eup %1404  ;;  %v717_v46 = vmul.f32 %v1403_v42, %v1401_v41 }
 0x415   :  { %v716_v45 = vmul.f32 %v1405_v43, %v1814_v33  ;;  %v1407_v47 = vpop.eup %1406  ;;  %v728_v33 = vld [vmem:[#allocation4 + $0x80] sm:$0xff] }
 0x417   :  { %v1852_v38 = vadd.f32 %v717_v46, %v716_v45 }
 0x419   :  { %1408 = vtanh.f32 %v1852_v38 }
 0x426   :  { %v1409_v48 = vpop.eup %1408 }
 0x427   :  { %v720_v49 = vmul.f32 %v1409_v48, %v1407_v47 }
 0x429   :  { %724 = vst [vmem:[#allocation9 + $0x18] sm:$0xff] %v720_v49  ;;  %v732_v50 = vpack.c.bf16 %v720_v49, %v720_v49 }
 0x42b   :  { %766 = vmatmul.mubr.bf16.vlgmr.msra.gmra.mxu0 %v732_v50  ;;  %807 = vmatmul.mubr.bf16.vlgmr.msra.gmra.mxu1 %v732_v50 }
 0x42c   :  { %856 = vmatpush1.bf16.msra.mxu0 %v1608_v2  ;;  %897 = vmatpush1.bf16.msra.mxu1 %v1621_v7 }
 0x42d   :  { %857 = vmatprep.subr.bf16.mxu0 %v1611_v3  ;;  %898 = vmatprep.subr.bf16.mxu1 %v1631_v10 }
 0x42e   :  { %887 = vmatprep.mubr.bf16.mxu0 %v1578_v0  ;;  %928 = vmatprep.mubr.bf16.mxu1 %v1578_v0 }
 0x430   :  { %858 = vmatpush1.bf16.msra.mxu0 %v1614_v4  ;;  %899 = vmatpush1.bf16.msra.mxu1 %v1633_v11 }
 0x431   :  { %859 = vmatprep.subr.bf16.mxu0 %v1617_v5  ;;  %900 = vmatprep.subr.bf16.mxu1 %v1641_v14 }
 0x434   :  { %860 = vmatpush1.bf16.msra.mxu0 %v1624_v8  ;;  %901 = vmatpush1.bf16.msra.mxu1 %v1645_v15 }
 0x435   :  { %861 = vmatprep.subr.bf16.mxu0 %v1628_v9  ;;  %902 = vmatprep.subr.bf16.mxu1 %v1648_v16 }
 0x438   :  { %862 = vmatpush1.bf16.msra.mxu0 %v1637_v12  ;;  %903 = vmatpush1.bf16.msra.mxu1 %v1657_v19 }
 0x439   :  { %863 = vmatprep.subr.bf16.mxu0 %v1639_v13  ;;  %904 = vmatprep.subr.bf16.mxu1 %v1660_v20 }
 0x43c   :  { %864 = vmatpush1.bf16.msra.mxu0 %v1651_v17  ;;  %905 = vmatpush1.bf16.msra.mxu1 %v1669_v23 }
 0x43d   :  { %865 = vmatprep.subr.bf16.mxu0 %v1654_v18  ;;  %906 = vmatprep.subr.bf16.mxu1 %v1672_v24 }
 0x440   :  { %866 = vmatpush1.bf16.msra.mxu0 %v1663_v21  ;;  %907 = vmatpush1.bf16.msra.mxu1 %v1681_v27 }
 0x441   :  { %867 = vmatprep.subr.bf16.mxu0 %v1665_v22  ;;  %908 = vmatprep.subr.bf16.mxu1 %v1684_v28 }
 0x444   :  { %868 = vmatpush1.bf16.msra.mxu0 %v1675_v25  ;;  %909 = vmatpush1.bf16.msra.mxu1 %v1691_v30 }
 0x445   :  { %869 = vmatprep.subr.bf16.mxu0 %v1678_v26  ;;  %910 = vmatprep.subr.bf16.mxu1 %v1694_v31 }
 0x448   :  { %870 = vmatpush1.bf16.msra.mxu0 %v1687_v29  ;;  %911 = vmatpush1.bf16.msra.mxu1 %v1698_v32 }
 0x449   :  { %977 = vmatprep.subr.bf16.mxu0 %v1606_v1  ;;  %1018 = vmatprep.subr.bf16.mxu1 %v1619_v6 }
 0x4eb   :  { %v767_v51 = vpop.f32.mrf.mxu0  ;;  %v808_v52 = vpop.f32.mrf.mxu1 }
 0x4ec   :  { %v815_v54 = vadd.f32 %v767_v51, %v728_v33  ;;  %v817_v1 = vadd.f32 %v808_v52, %v730_v34  ;;  %v1481_v34 = vld [vmem:[#allocation7 + $0xc8] ss:$16 sps:$4 sm:$0xff]  }
 0x4ed   :  { %v769_v55 = vpop.f32.mrf.mxu0  ;;  %v810_v56 = vpop.f32.mrf.mxu1 }
 0x4ee   :  { %v1275_v57 = vmul.f32 -1.442695, %v815_v54  ;;  %v816_v58 = vadd.f32 %v769_v55, %v729_v53  ;;  %v1277_v6 = vmul.f32 -1.442695, %v817_v1  ;;  %v818_v37 = vadd.f32 %v810_v56, %v731_v35  ;;  %v1482_v1 = vld [vmem:[#allocation7 + $0xa4] ss:$16 sps:$4 sm:$0xff]  }
 0x4ef   :  { %v771_v59 = vpop.f32.mrf.mxu0  ;;  %v812_v60 = vpop.f32.mrf.mxu1  ;;  %v1483_v35 = vld [vmem:[#allocation7 + $0xac] ss:$16 sps:$4 sm:$0xff]  }
 0x4f0   :  { %1410 = vpow2.f32 %v1275_v57  ;;  %v1276_v61 = vmul.f32 -1.442695, %v816_v58  ;;  %v1476_v59 = vld [vmem:[#allocation7 + $0xe0] ss:$16 sps:$4 sm:$0xff]   ;;  %v1477_v60 = vld [vmem:[#allocation7 + $0xe8] ss:$16 sps:$4 sm:$0xff]  }
 0x4f1   :  { %v772_v62 = vpop.f32.mrf.mxu0  ;;  %v813_v63 = vpop.f32.mrf.mxu1 }
 0x4f2   :  { %1412 = vpow2.f32 %v1276_v61  ;;  %v1478_v61 = vld [vmem:[#allocation7 + $0xc4] ss:$16 sps:$4 sm:$0xff]   ;;  %v1479_v62 = vld [vmem:[#allocation7 + $0xcc] ss:$16 sps:$4 sm:$0xff]   ;;  %v1480_v63 = vld [vmem:[#allocation7 + $0xc0] ss:$16 sps:$4 sm:$0xff]  }
 0x4f3   :  { %1414 = vpow2.f32 %v1277_v6  ;;  %v1484_v6 = vld [vmem:[#allocation7 + $0xa0] ss:$16 sps:$4 sm:$0xff]  }
 0x4fd   :  { %v1411_v36 = vpop.eup %1410 }
 0x4fe   :  { %v828_v39 = vadd.f32 1.0, %v1411_v36  ;;  %v1485_v36 = vld [vmem:[#allocation7 + $0xa8] ss:$16 sps:$4 sm:$0xff]  }
 0x4ff   :  { %v1413_v40 = vpop.eup %1412 }
 0x500   :  { %1416 = vrcp.f32 %v828_v39  ;;  %v829_v41 = vadd.f32 1.0, %v1413_v40  ;;  %v1415_v42 = vpop.eup %1414  ;;  %v1487_v39 = vld [vmem:[#allocation7 + $0x8c] ss:$16 sps:$4 sm:$0xff]   ;;  %v1488_v40 = vld [vmem:[#allocation7 + $0x80] ss:$16 sps:$4 sm:$0xff]  }
 0x501   :  { %1418 = vtanh.f32 %v818_v37  ;;  %v830_v46 = vadd.f32 1.0, %v1415_v42  ;;  %v1486_v37 = vld [vmem:[#allocation7 + $0x84] ss:$16 sps:$4 sm:$0xff]   ;;  %v1491_v42 = vld [vmem:[#allocation7 + $0x6c] ss:$16 sps:$4 sm:$0xff]  }
 0x502   :  { %1420 = vrcp.f32 %v829_v41  ;;  %v1489_v41 = vld [vmem:[#allocation7 + $0x88] ss:$16 sps:$4 sm:$0xff]  }
 0x503   :  { %1422 = vrcp.f32 %v830_v46  ;;  %v1495_v46 = vld [vmem:[#allocation7 + $0x4c] ss:$16 sps:$4 sm:$0xff]  }
 0x50d   :  { %v1417_v43 = vpop.eup %1416 }
 0x50e   :  { %v1419_v44 = vpop.eup %1418 }
 0x50f   :  { %v1421_v45 = vpop.eup %1420  ;;  %v839_v48 = vmul.f32 %v1419_v44, %v1417_v43  ;;  %v1492_v43 = vld [vmem:[#allocation7 + $0x60] ss:$16 sps:$4 sm:$0xff]   ;;  %v1493_v44 = vld [vmem:[#allocation7 + $0x68] ss:$16 sps:$4 sm:$0xff]  }
 0x510   :  { %v838_v47 = vmul.f32 %v1421_v45, %v1852_v38  ;;  %v1423_v50 = vpop.eup %1422  ;;  %v1494_v45 = vld [vmem:[#allocation7 + $0x44] ss:$16 sps:$4 sm:$0xff]  }
 0x512   :  { %v1890_v49 = vadd.f32 %v839_v48, %v838_v47  ;;  %v1496_v47 = vld [vmem:[#allocation7 + $0x40] ss:$16 sps:$4 sm:$0xff]   ;;  %v1497_v48 = vld [vmem:[#allocation7 + $0x48] ss:$16 sps:$4 sm:$0xff]  }
 0x514   :  { %1424 = vtanh.f32 %v1890_v49 }
 0x521   :  { %v1425_v33 = vpop.eup %1424 }
 0x522   :  { %v842_v51 = vmul.f32 %v1425_v33, %v1423_v50  ;;  %v1499_v50 = vld [vmem:[#allocation7 + $0x2c] ss:$16 sps:$4 sm:$0xff]   ;;  %v1500_v33 = vld [vmem:[#allocation7 + $0x20] ss:$16 sps:$4 sm:$0xff]  }
 0x524   :  { %846 = vst [vmem:[#allocation9 + $0x20] sm:$0xff] %v842_v51  ;;  %v854_v52 = vpack.c.bf16 %v842_v51, %v842_v51  ;;  %v1501_v51 = vld [vmem:[#allocation7 + $0x28] ss:$16 sps:$4 sm:$0xff]  }
 0x526   :  { %888 = vmatmul.mubr.bf16.vlgmr.msra.gmra.mxu0 %v854_v52  ;;  %929 = vmatmul.mubr.bf16.vlgmr.msra.gmra.mxu1 %v854_v52  ;;  %v1502_v52 = vld [vmem:[#allocation7 + $0x4] ss:$16 sps:$4 sm:$0xff]  }
 0x527   :  { %978 = vmatpush1.bf16.msra.mxu0 %v1608_v2  ;;  %1019 = vmatpush1.bf16.msra.mxu1 %v1621_v7  ;;  %v1474_v2 = vld [vmem:[#allocation7 + $0xe4] ss:$16 sps:$4 sm:$0xff]  }
 0x528   :  { %979 = vmatprep.subr.bf16.mxu0 %v1611_v3  ;;  %1020 = vmatprep.subr.bf16.mxu1 %v1631_v10  ;;  %v1475_v3 = vld [vmem:[#allocation7 + $0xec] ss:$16 sps:$4 sm:$0xff]  }
 0x529   :  { %1009 = vmatprep.mubr.bf16.mxu0 %v1578_v0  ;;  %1050 = vmatprep.mubr.bf16.mxu1 %v1578_v0 }
 0x52b   :  { %980 = vmatpush1.bf16.msra.mxu0 %v1614_v4  ;;  %1021 = vmatpush1.bf16.msra.mxu1 %v1633_v11  ;;  %v850_v4 = vld [vmem:[#allocation4 + $0xa0] sm:$0xff] }
 0x52c   :  { %981 = vmatprep.subr.bf16.mxu0 %v1617_v5  ;;  %1022 = vmatprep.subr.bf16.mxu1 %v1641_v14 }
 0x52f   :  { %982 = vmatpush1.bf16.msra.mxu0 %v1624_v8  ;;  %1023 = vmatpush1.bf16.msra.mxu1 %v1645_v15  ;;  %v851_v8 = vld [vmem:[#allocation4 + $0xa8] sm:$0xff] }
 0x530   :  { %983 = vmatprep.subr.bf16.mxu0 %v1628_v9  ;;  %1024 = vmatprep.subr.bf16.mxu1 %v1648_v16 }
 0x533   :  { %984 = vmatpush1.bf16.msra.mxu0 %v1637_v12  ;;  %1025 = vmatpush1.bf16.msra.mxu1 %v1657_v19  ;;  %v852_v19 = vld [vmem:[#allocation4 + $0xb0] sm:$0xff] }
 0x534   :  { %985 = vmatprep.subr.bf16.mxu0 %v1639_v13  ;;  %1026 = vmatprep.subr.bf16.mxu1 %v1660_v20 }
 0x537   :  { %986 = vmatpush1.bf16.msra.mxu0 %v1651_v17  ;;  %1027 = vmatpush1.bf16.msra.mxu1 %v1669_v23 }
 0x538   :  { %987 = vmatprep.subr.bf16.mxu0 %v1654_v18  ;;  %1028 = vmatprep.subr.bf16.mxu1 %v1672_v24 }
 0x53b   :  { %988 = vmatpush1.bf16.msra.mxu0 %v1663_v21  ;;  %1029 = vmatpush1.bf16.msra.mxu1 %v1681_v27  ;;  %v853_v21 = vld [vmem:[#allocation4 + $0xb8] sm:$0xff] }
 0x53c   :  { %989 = vmatprep.subr.bf16.mxu0 %v1665_v22  ;;  %1030 = vmatprep.subr.bf16.mxu1 %v1684_v28 }
 0x53f   :  { %990 = vmatpush1.bf16.msra.mxu0 %v1675_v25  ;;  %1031 = vmatpush1.bf16.msra.mxu1 %v1691_v30 }
 0x540   :  { %991 = vmatprep.subr.bf16.mxu0 %v1678_v26  ;;  %1032 = vmatprep.subr.bf16.mxu1 %v1694_v31 }
 0x543   :  { %992 = vmatpush1.bf16.msra.mxu0 %v1687_v29  ;;  %1033 = vmatpush1.bf16.msra.mxu1 %v1698_v32 }
 0x544   :  { %1099 = vmatprep.subr.bf16.mxu0 %v1474_v2  ;;  %1140 = vmatprep.subr.bf16.mxu1 %v1475_v3  ;;  %v1503_v2 = vld [vmem:[#allocation7 + $0xc] ss:$16 sps:$4 sm:$0xff]   ;;  %v1504_v3 = vld [vmem:[#allocation7] ss:$16 sps:$4 sm:$0xff]  }
 0x5e6   :  { %v889_v5 = vpop.f32.mrf.mxu0  ;;  %v930_v7 = vpop.f32.mrf.mxu1 }
 0x5e7   :  { %v937_v9 = vadd.f32 %v889_v5, %v850_v4  ;;  %v939_v20 = vadd.f32 %v930_v7, %v852_v19  ;;  %v1505_v4 = vld [vmem:[#allocation7 + $0x8] ss:$16 sps:$4 sm:$0xff]   ;;  %v972_v5 = vld [vmem:[#allocation4 + $0xc0] sm:$0xff] }
 0x5e8   :  { %v891_v10 = vpop.f32.mrf.mxu0  ;;  %v932_v11 = vpop.f32.mrf.mxu1 }
 0x5e9   :  { %v1278_v12 = vmul.f32 -1.442695, %v937_v9  ;;  %v938_v13 = vadd.f32 %v891_v10, %v851_v8  ;;  %v1280_v22 = vmul.f32 -1.442695, %v939_v20  ;;  %v940_v24 = vadd.f32 %v932_v11, %v853_v21  ;;  %v973_v9 = vld [vmem:[#allocation4 + $0xc8] sm:$0xff]  ;;  %v974_v20 = vld [vmem:[#allocation4 + $0xd0] sm:$0xff] }
 0x5ea   :  { %v893_v14 = vpop.f32.mrf.mxu0  ;;  %v934_v15 = vpop.f32.mrf.mxu1 }
 0x5eb   :  { %1426 = vpow2.f32 %v1278_v12  ;;  %v1279_v16 = vmul.f32 -1.442695, %v938_v13 }
 0x5ec   :  { %v894_v17 = vpop.f32.mrf.mxu0  ;;  %v935_v18 = vpop.f32.mrf.mxu1 }
 0x5ed   :  { %1428 = vpow2.f32 %v1279_v16 }
 0x5ee   :  { %1430 = vpow2.f32 %v1280_v22  ;;  %v975_v22 = vld [vmem:[#allocation4 + $0xd8] sm:$0xff] }
 0x5f8   :  { %v1427_v23 = vpop.eup %1426 }
 0x5f9   :  { %v950_v25 = vadd.f32 1.0, %v1427_v23 }
 0x5fa   :  { %v1429_v26 = vpop.eup %1428 }
 0x5fb   :  { %1432 = vrcp.f32 %v950_v25  ;;  %v951_v27 = vadd.f32 1.0, %v1429_v26  ;;  %v1431_v28 = vpop.eup %1430 }
 0x5fc   :  { %1434 = vtanh.f32 %v940_v24  ;;  %v952_v32 = vadd.f32 1.0, %v1431_v28 }
 0x5fd   :  { %1436 = vrcp.f32 %v951_v27 }
 0x5fe   :  { %1438 = vrcp.f32 %v952_v32 }
 0x608   :  { %v1433_v29 = vpop.eup %1432 }
 0x609   :  { %v1435_v30 = vpop.eup %1434 }
 0x60a   :  { %v1437_v31 = vpop.eup %1436  ;;  %v961_v53 = vmul.f32 %v1435_v30, %v1433_v29 }
 0x60b   :  { %v960_v38 = vmul.f32 %v1437_v31, %v1890_v49  ;;  %v1439_v55 = vpop.eup %1438  ;;  %v1498_v49 = vld [vmem:[#allocation7 + $0x24] ss:$16 sps:$4 sm:$0xff]  }
 0x60d   :  { %v1926_v54 = vadd.f32 %v961_v53, %v960_v38 }
 0x60f   :  { %1440 = vtanh.f32 %v1926_v54 }
 0x61c   :  { %v1441_v56 = vpop.eup %1440 }
 0x61d   :  { %v964_v57 = vmul.f32 %v1441_v56, %v1439_v55 }
 0x61f   :  { %968 = vst [vmem:[#allocation9 + $0x28] sm:$0xff] %v964_v57  ;;  %v976_v58 = vpack.c.bf16 %v964_v57, %v964_v57 }
 0x621   :  { %1010 = vmatmul.mubr.bf16.vlgmr.msra.gmra.mxu0 %v976_v58  ;;  %1051 = vmatmul.mubr.bf16.vlgmr.msra.gmra.mxu1 %v976_v58 }
 0x622   :  { %1100 = vmatpush1.bf16.msra.mxu0 %v1476_v59  ;;  %1141 = vmatpush1.bf16.msra.mxu1 %v1477_v60 }
 0x623   :  { %1101 = vmatprep.subr.bf16.mxu0 %v1478_v61  ;;  %1142 = vmatprep.subr.bf16.mxu1 %v1479_v62  ;;  %v1094_v61 = vld [vmem:[#allocation4 + $0xe0] sm:$0xff] }
 0x624   :  { %1131 = vmatprep.mubr.bf16.mxu0 %v1578_v0  ;;  %1172 = vmatprep.mubr.bf16.mxu1 %v1578_v0  ;;  %v1490_v0 = vld [vmem:[#allocation7 + $0x64] ss:$16 sps:$4 sm:$0xff]  }
 0x626   :  { %1102 = vmatpush1.bf16.msra.mxu0 %v1480_v63  ;;  %1143 = vmatpush1.bf16.msra.mxu1 %v1481_v34  ;;  %v1095_v34 = vld [vmem:[#allocation4 + $0xe8] sm:$0xff] }
 0x627   :  { %1103 = vmatprep.subr.bf16.mxu0 %v1482_v1  ;;  %1144 = vmatprep.subr.bf16.mxu1 %v1483_v35 }
 0x62a   :  { %1104 = vmatpush1.bf16.msra.mxu0 %v1484_v6  ;;  %1145 = vmatpush1.bf16.msra.mxu1 %v1485_v36 }
 0x62b   :  { %1105 = vmatprep.subr.bf16.mxu0 %v1486_v37  ;;  %1146 = vmatprep.subr.bf16.mxu1 %v1487_v39 }
 0x62e   :  { %1106 = vmatpush1.bf16.msra.mxu0 %v1488_v40  ;;  %1147 = vmatpush1.bf16.msra.mxu1 %v1489_v41 }
 0x62f   :  { %1107 = vmatprep.subr.bf16.mxu0 %v1490_v0  ;;  %1148 = vmatprep.subr.bf16.mxu1 %v1491_v42  ;;  %v1096_v42 = vld [vmem:[#allocation4 + $0xf0] sm:$0xff] }
 0x632   :  { %1108 = vmatpush1.bf16.msra.mxu0 %v1492_v43  ;;  %1149 = vmatpush1.bf16.msra.mxu1 %v1493_v44  ;;  %v1097_v44 = vld [vmem:[#allocation4 + $0xf8] sm:$0xff] }
 0x633   :  { %1109 = vmatprep.subr.bf16.mxu0 %v1494_v45  ;;  %1150 = vmatprep.subr.bf16.mxu1 %v1495_v46 }
 0x636   :  { %1110 = vmatpush1.bf16.msra.mxu0 %v1496_v47  ;;  %1151 = vmatpush1.bf16.msra.mxu1 %v1497_v48 }
 0x637   :  { %1111 = vmatprep.subr.bf16.mxu0 %v1498_v49  ;;  %1152 = vmatprep.subr.bf16.mxu1 %v1499_v50 }
 0x63a   :  { %1112 = vmatpush1.bf16.msra.mxu0 %v1500_v33  ;;  %1153 = vmatpush1.bf16.msra.mxu1 %v1501_v51 }
 0x63b   :  { %1113 = vmatprep.subr.bf16.mxu0 %v1502_v52  ;;  %1154 = vmatprep.subr.bf16.mxu1 %v1503_v2 }
 0x63e   :  { %1114 = vmatpush1.bf16.msra.mxu0 %v1504_v3  ;;  %1155 = vmatpush1.bf16.msra.mxu1 %v1505_v4 }
 0x6e1   :  { %v1011_v7 = vpop.f32.mrf.mxu0  ;;  %v1052_v8 = vpop.f32.mrf.mxu1 }
 0x6e2   :  { %v1059_v10 = vadd.f32 %v1011_v7, %v972_v5  ;;  %v1061_v21 = vadd.f32 %v1052_v8, %v974_v20 }
 0x6e3   :  { %v1013_v11 = vpop.f32.mrf.mxu0  ;;  %v1054_v12 = vpop.f32.mrf.mxu1 }
 0x6e4   :  { %v1281_v13 = vmul.f32 -1.442695, %v1059_v10  ;;  %v1060_v14 = vadd.f32 %v1013_v11, %v973_v9  ;;  %v1283_v23 = vmul.f32 -1.442695, %v1061_v21  ;;  %v1062_v25 = vadd.f32 %v1054_v12, %v975_v22 }
 0x6e5   :  { %v1015_v15 = vpop.f32.mrf.mxu0  ;;  %v1056_v16 = vpop.f32.mrf.mxu1 }
 0x6e6   :  { %1442 = vpow2.f32 %v1281_v13  ;;  %v1282_v17 = vmul.f32 -1.442695, %v1060_v14 }
 0x6e7   :  { %v1016_v18 = vpop.f32.mrf.mxu0  ;;  %v1057_v19 = vpop.f32.mrf.mxu1 }
 0x6e8   :  { %1444 = vpow2.f32 %v1282_v17 }
 0x6e9   :  { %1446 = vpow2.f32 %v1283_v23 }
 0x6f3   :  { %v1443_v24 = vpop.eup %1442 }
 0x6f4   :  { %v1072_v26 = vadd.f32 1.0, %v1443_v24 }
 0x6f5   :  { %v1445_v27 = vpop.eup %1444 }
 0x6f6   :  { %1448 = vrcp.f32 %v1072_v26  ;;  %v1073_v28 = vadd.f32 1.0, %v1445_v27  ;;  %v1447_v29 = vpop.eup %1446 }
 0x6f7   :  { %1450 = vtanh.f32 %v1062_v25  ;;  %v1074_v38 = vadd.f32 1.0, %v1447_v29 }
 0x6f8   :  { %1452 = vrcp.f32 %v1073_v28 }
 0x6f9   :  { %1454 = vrcp.f32 %v1074_v38 }
 0x703   :  { %v1449_v30 = vpop.eup %1448 }
 0x704   :  { %v1451_v31 = vpop.eup %1450 }
 0x705   :  { %v1453_v32 = vpop.eup %1452  ;;  %v1083_v55 = vmul.f32 %v1451_v31, %v1449_v30 }
 0x706   :  { %v1082_v53 = vmul.f32 %v1453_v32, %v1926_v54  ;;  %v1455_v57 = vpop.eup %1454 }
 0x708   :  { %v1084_v56 = vadd.f32 %v1083_v55, %v1082_v53 }
 0x70a   :  { %1456 = vtanh.f32 %v1084_v56 }
 0x717   :  { %v1457_v58 = vpop.eup %1456 }
 0x718   :  { %v1086_v59 = vmul.f32 %v1457_v58, %v1455_v57 }
 0x71a   :  { %1090 = vst [vmem:[#allocation9 + $0x30] sm:$0xff] %v1086_v59  ;;  %v1098_v60 = vpack.c.bf16 %v1086_v59, %v1086_v59 }
 0x71c   :  { %1132 = vmatmul.mubr.bf16.vlgmr.msra.gmra.mxu0 %v1098_v60  ;;  %1173 = vmatmul.mubr.bf16.vlgmr.msra.gmra.mxu1 %v1098_v60 }
 0x7dc   :  { %v1133_v62 = vpop.f32.mrf.mxu0  ;;  %v1174_v63 = vpop.f32.mrf.mxu1 }
 0x7dd   :  { %v1181_v1 = vadd.f32 %v1133_v62, %v1094_v61  ;;  %v1183_v43 = vadd.f32 %v1174_v63, %v1096_v42 }
 0x7de   :  { %v1135_v35 = vpop.f32.mrf.mxu0  ;;  %v1176_v6 = vpop.f32.mrf.mxu1 }
 0x7df   :  { %v1284_v36 = vmul.f32 -1.442695, %v1181_v1  ;;  %v1182_v54 = vadd.f32 %v1135_v35, %v1095_v34  ;;  %v1286_v45 = vmul.f32 -1.442695, %v1183_v43  ;;  %v1184_v47 = vadd.f32 %v1176_v6, %v1097_v44 }
 0x7e0   :  { %v1137_v37 = vpop.f32.mrf.mxu0  ;;  %v1178_v39 = vpop.f32.mrf.mxu1 }
 0x7e1   :  { %1458 = vpow2.f32 %v1284_v36  ;;  %v1285_v40 = vmul.f32 -1.442695, %v1182_v54 }
 0x7e2   :  { %v1138_v41 = vpop.f32.mrf.mxu0  ;;  %v1179_v0 = vpop.f32.mrf.mxu1 }
 0x7e3   :  { %1460 = vpow2.f32 %v1285_v40 }
 0x7e4   :  { %1462 = vpow2.f32 %v1286_v45 }
 0x7ee   :  { %v1459_v46 = vpop.eup %1458 }
 0x7ef   :  { %v1194_v48 = vadd.f32 1.0, %v1459_v46 }
 0x7f0   :  { %v1461_v49 = vpop.eup %1460 }
 0x7f1   :  { %1464 = vrcp.f32 %v1194_v48  ;;  %v1195_v50 = vadd.f32 1.0, %v1461_v49  ;;  %v1463_v33 = vpop.eup %1462 }
 0x7f2   :  { %1466 = vtanh.f32 %v1184_v47  ;;  %v1196_v3 = vadd.f32 1.0, %v1463_v33 }
 0x7f3   :  { %1468 = vrcp.f32 %v1195_v50 }
 0x7f4   :  { %1470 = vrcp.f32 %v1196_v3 }
 0x7fe   :  { %v1465_v51 = vpop.eup %1464 }
 0x7ff   :  { %v1467_v52 = vpop.eup %1466 }
 0x800   :  { %v1469_v2 = vpop.eup %1468  ;;  %v1205_v5 = vmul.f32 %v1467_v52, %v1465_v51 }
 0x801   :  { %v1204_v4 = vmul.f32 %v1469_v2, %v1084_v56  ;;  %v1471_v8 = vpop.eup %1470 }
 0x803   :  { %v1206_v7 = vadd.f32 %v1205_v5, %v1204_v4 }
 0x805   :  { %1472 = vtanh.f32 %v1206_v7 }
 0x812   :  { %v1473_v9 = vpop.eup %1472 }
 0x813   :  { %v1208_v10 = vmul.f32 %v1473_v9, %v1471_v8 }
 0x815   :  { %1212 = vst [vmem:[#allocation9 + $0x38] sm:$0xff] %v1208_v10 }
 0x816   :  { %1557 = shalt.err (!%p1554_p0)
}
 0x817   :  { %s1581_s24 = smov 128   ;;  %s1582_s25 = smov 8  }
 0x818   :  { %1224 = dma.vmem_to_hbm [thread:$0]  %s1219_s1, 1024, %s1937_s2, [#allocation6], %s1581_s24, %s1581_s24, %s1582_s25  }
 0x819   :  { %1570 = dma.done.wait [#allocation6], 1024  }
 0x81a   :  { %1571 = vsyncadd [#allocation6], 4294966272 }
 0x81b   :  { %1228 = vsyncpa [#allocation5], 1 }
 0x81c   :  { %1229 = vsyncpa [#allocation8], 1 }
 0x81d   :  { %1230 = vsyncpa [#allocation6], 1 }

</bundles_post_ra>
